<compile_context>
chip_gen: v7x
topology: tpu7x:2x2x1
jax: 0.10.0
libtpu: 0.0.40
codegen_flags: <defaults>
</compile_context>

<pallas_src>
import jax
import jax.numpy as jnp
from jax import lax
from jax.experimental import pallas as pl
from jax.experimental.pallas import tpu as pltpu


LANE = 128
SUBLANE = 8


def _round_up(x: int, m: int) -> int:
    return ((x + m - 1) // m) * m


# ---------------- Pallas kernel: block one-hot + folded 2-layer MLP ----------------
def parser_fused_kernel(ids_ref,                 # (TM, n_feat) int32, per-slot offsets pre-added
                        wfold_ref,               # (K_pad, H_pad) folded E@W_h (VMEM-resident)
                        bh_ref,                  # (1, H_pad)
                        wo_ref,                  # (H_pad, C_pad)
                        bo_ref,                  # (1, C_pad)
                        out_ref):                # (TM, C_pad)
    TM = out_ref.shape[0]
    K_pad = wfold_ref.shape[0]
    n_feat = ids_ref.shape[1]

    ids = ids_ref[...]                                           # (TM, n_feat) int32

    # Lane iota hoisted out of the feature loop (computed once per tile).
    iota_k = lax.broadcasted_iota(jnp.int32, (1, K_pad), 1)      # (1, K_pad)

    # Block one-hot: the per-slot row ranges of the folded table are disjoint, so the
    # sum of the 16 per-slot one-hot rows is an exact 0/1 matrix.  (1.0 / 0.0 are exact,
    # so the subsequent matmul is an exact gather+projection.)
    onehot = jnp.zeros((TM, K_pad), jnp.float32)
    for f in range(n_feat):                                       # small static unroll
        onehot = onehot + jnp.where(ids[:, f:f + 1] == iota_k, 1.0, 0.0)

    # One well-shaped MXU matmul replaces 32 tiny gather/project matmuls.
    w_dt = wfold_ref.dtype
    h_pre = jnp.dot(onehot.astype(w_dt), wfold_ref[...],
                    preferred_element_type=jnp.float32) + bh_ref[...]
    h = jnp.maximum(h_pre, 0.0)
    # F.dropout(training=False) is the identity at inference time.
    # TODO(synk): training-mode dropout (pltpu.prng_seed / prng_random_bits + 1/(1-p) scale).
    out = jnp.dot(h.astype(wo_ref.dtype), wo_ref[...],
                  preferred_element_type=jnp.float32) + bo_ref[...]
    out_ref[...] = out.astype(out_ref.dtype)


# ---------------- Wrapper: folding, padding, tiling, pallas_call ----------------
def parser_model_forward(word_ids, tag_ids, deprel_ids, params, *,
                         batch_tile=256, use_bf16=False):
    word_E = params["word_E"].astype(jnp.float32)
    tag_E = params["tag_E"].astype(jnp.float32)
    deprel_E = params["deprel_E"].astype(jnp.float32)
    w_h = params["w_h"].astype(jnp.float32)   # (D_in, H)
    b_h = params["b_h"].astype(jnp.float32)   # (1, H)
    w_o = params["w_o"].astype(jnp.float32)   # (H, C)
    b_o = params["b_o"].astype(jnp.float32)   # (1, C)

    B = word_ids.shape[0]
    nwf, ntf, ndf = word_ids.shape[1], tag_ids.shape[1], deprel_ids.shape[1]
    n_feat_total = nwf + ntf + ndf
    embed = word_E.shape[1]
    D_in = n_feat_total * embed
    H, C = w_h.shape[1], w_o.shape[1]
    assert w_h.shape[0] == D_in

    # --- Fold embedding tables into the hidden-layer weights (one (n_ids, H) block per
    #     feature slot), stack all slots along K.  In a real model this is done once at
    #     parameter-setup time, not per forward call.
    blocks, bases = [], []
    base, col = 0, 0
    for table, n_feat in ((word_E, nwf), (tag_E, ntf), (deprel_E, ndf)):
        n_ids = table.shape[0]
        for _ in range(n_feat):
            blocks.append(table @ w_h[col:col + embed, :])        # (n_ids, H)
            bases.append(base)
            base += n_ids
            col += embed
    folded = jnp.concatenate(blocks, axis=0)                      # (K_total, H)
    K_total = base

    # --- Lane-dense padding (padded rows/cols are exact zeros; sliced off below).
    K_pad = _round_up(K_total, LANE)
    H_pad = _round_up(H, LANE)
    C_pad = _round_up(C, LANE)
    w_dtype = jnp.bfloat16 if use_bf16 else jnp.float32           # bf16: optional MXU boost (v6e/v7x)
    folded_p = jnp.pad(folded, ((0, K_pad - K_total), (0, H_pad - H))).astype(w_dtype)
    b_h_p = jnp.pad(b_h, ((0, 0), (0, H_pad - H)))
    w_o_p = jnp.pad(w_o, ((0, H_pad - H), (0, C_pad - C))).astype(w_dtype)
    b_o_p = jnp.pad(b_o, ((0, 0), (0, C_pad - C)))

    # --- Merge the three id streams into one (B, 16) int32 array with per-slot base
    #     offsets pre-added, so each id indexes the stacked folded table directly.
    ids_all = jnp.concatenate([word_ids, tag_ids, deprel_ids], axis=1).astype(jnp.int32)
    ids_all = ids_all + jnp.asarray(bases, jnp.int32)[None, :]

    # --- Batch tiling.  Small B -> single grid step (per-step overhead dominates).
    #     Large B -> >= 2 steps along the "parallel" axis so both v7x TensorCores work.
    B_pad8 = _round_up(B, SUBLANE)
    TM = min(_round_up(batch_tile, SUBLANE), B_pad8)
    if B_pad8 >= 2 * LANE and B_pad8 <= TM:
        TM = max(LANE, _round_up((B_pad8 + 1) // 2, SUBLANE))
    B_pad = _round_up(B_pad8, TM)
    # Padded batch rows get id 0 (a valid row) -> harmless garbage, sliced off below.
    ids_all = jnp.pad(ids_all, ((0, B_pad - B), (0, 0)))

    grid = (B_pad // TM,)
    resident = lambda shape: pl.BlockSpec(shape, lambda i: (0, 0))   # stays in VMEM

    itemsize = jnp.dtype(w_dtype).itemsize
    flops = 2 * B_pad * (K_pad * H_pad + H_pad * C_pad)
    bytes_accessed = (4 * ids_all.size
                      + itemsize * (folded_p.size + w_o_p.size)
                      + 4 * (b_h_p.size + b_o_p.size)
                      + 4 * B_pad * C_pad)

    out = pl.pallas_call(
        parser_fused_kernel,
        out_shape=jax.ShapeDtypeStruct((B_pad, C_pad), jnp.float32),
        grid=grid,
        in_specs=[
            pl.BlockSpec((TM, n_feat_total), lambda i: (i, 0)),      # id stream (per tile)
            resident(folded_p.shape),
            resident(b_h_p.shape),
            resident(w_o_p.shape),
            resident(b_o_p.shape),
        ],
        out_specs=pl.BlockSpec((TM, C_pad), lambda i: (i, 0)),
        compiler_params=pltpu.CompilerParams(
            dimension_semantics=("parallel",)),                      # batch tiles independent
        cost_estimate=pl.CostEstimate(flops=int(flops), transcendentals=0,
                                      bytes_accessed=int(bytes_accessed)),
    )(ids_all, folded_p, b_h_p, w_o_p, b_o_p)

    return out[:B, :C]


# ---------------- Demo / self-check ----------------
if __name__ == "__main__":
    # Small config consistent with the module's __init__ / create_net_layers.
    B = 24
    n_word_ids, n_tag_ids, n_deprel_ids = 50, 12, 10
    n_word_feat, n_tag_feat, n_deprel_feat = 6, 6, 4     # N = 16
    embed_size = 8                                       # D_in = 16 * 8 = 128
    hidden_size = 64
    n_classes = 19

    D_in = (n_word_feat + n_tag_feat + n_deprel_feat) * embed_size

    key = jax.random.PRNGKey(0)
    ks = jax.random.split(key, 10)

    params = {
        "word_E":   jax.random.normal(ks[0], (n_word_ids, embed_size), jnp.float32) * 0.1,
        "tag_E":    jax.random.normal(ks[1], (n_tag_ids, embed_size), jnp.float32) * 0.1,
        "deprel_E": jax.random.normal(ks[2], (n_deprel_ids, embed_size), jnp.float32) * 0.1,
        # hidden_layer: nn.Linear(embed_size*N, hidden_size) stored as (in, out)
        "w_h": jax.random.normal(ks[3], (D_in, hidden_size), jnp.float32) * 0.05,
        "b_h": jax.random.normal(ks[4], (1, hidden_size), jnp.float32) * 0.01,
        # output_layer: nn.Linear(hidden_size, n_classes) stored as (in, out)
        "w_o": jax.random.normal(ks[5], (hidden_size, n_classes), jnp.float32) * 0.05,
        "b_o": jax.random.normal(ks[6], (1, n_classes), jnp.float32) * 0.01,
    }

    word_ids   = jax.random.randint(ks[7], (B, n_word_feat), 0, n_word_ids, jnp.int32)
    tag_ids    = jax.random.randint(ks[8], (B, n_tag_feat), 0, n_tag_ids, jnp.int32)
    deprel_ids = jax.random.randint(ks[9], (B, n_deprel_feat), 0, n_deprel_ids, jnp.int32)

    # Reference: plain-JAX forward (eval mode, dropout = identity).
    x_ref = jnp.concatenate([
        jnp.take(params["word_E"], word_ids, axis=0).reshape(B, -1),
        jnp.take(params["tag_E"], tag_ids, axis=0).reshape(B, -1),
        jnp.take(params["deprel_E"], deprel_ids, axis=0).reshape(B, -1),
    ], axis=1)
    h_ref = jnp.maximum(x_ref @ params["w_h"] + params["b_h"], 0.0)
    pred_ref = h_ref @ params["w_o"] + params["b_o"]

    # 1) Default tiling: B < batch_tile -> single grid step.
    pred = parser_model_forward(word_ids, tag_ids, deprel_ids, params)
    pred = jax.block_until_ready(pred)
    assert pred.shape == (B, n_classes)
    assert jnp.allclose(pred, pred_ref, atol=1e-4, rtol=1e-4), (
        float(jnp.max(jnp.abs(pred - pred_ref))))

    # 2) Tiny tile to exercise the batch grid (grid=(3,)) at this small demo size.
    pred_tiled = parser_model_forward(word_ids, tag_ids, deprel_ids, params, batch_tile=8)
    pred_tiled = jax.block_until_ready(pred_tiled)
    assert jnp.allclose(pred_tiled, pred_ref, atol=1e-4, rtol=1e-4), (
        float(jnp.max(jnp.abs(pred_tiled - pred_ref))))

    print("KERNEL_OK")
</pallas_src>

<mosaic_0001>
module attributes {stable_mosaic.version = 11 : i64} {
  func.func @parser_fused_kernel(%arg0: i32, %arg1: memref<24x16xi32, #tpu.memory_space<vmem>>, %arg2: memref<512x128xf32, #tpu.memory_space<vmem>>, %arg3: memref<1x128xf32, #tpu.memory_space<vmem>>, %arg4: memref<128x128xf32, #tpu.memory_space<vmem>>, %arg5: memref<1x128xf32, #tpu.memory_space<vmem>>, %arg6: memref<24x128xf32, #tpu.memory_space<vmem>>) attributes {dimension_semantics = [#tpu.dimension_semantics<parallel>], iteration_bounds = array<i64: 1>, scalar_prefetch = 0 : i64, scratch_operands = 0 : i64, tpu.core_type = #tpu.core_type<tc>, window_params = [{transform_indices = @transform_0, window_bounds = array<i64: 24, 16>}, {pipeline_mode = #tpu.pipeline_mode<synchronous>, transform_indices = @transform_1, window_bounds = array<i64: 512, 128>}, {pipeline_mode = #tpu.pipeline_mode<synchronous>, transform_indices = @transform_2, window_bounds = array<i64: 1, 128>}, {pipeline_mode = #tpu.pipeline_mode<synchronous>, transform_indices = @transform_3, window_bounds = array<i64: 128, 128>}, {pipeline_mode = #tpu.pipeline_mode<synchronous>, transform_indices = @transform_4, window_bounds = array<i64: 1, 128>}, {transform_indices = @transform_5, window_bounds = array<i64: 24, 128>}]} {
    %c0 = arith.constant 0 : index
    %c0_0 = arith.constant 0 : index
    %0 = vector.load %arg1[%c0, %c0_0] : memref<24x16xi32, #tpu.memory_space<vmem>>, vector<24x16xi32>
    %1 = tpu.iota {dimensions = array<i32: 1>} : vector<1x512xi32>
    %cst = arith.constant 0.000000e+00 : f32
    %2 = vector.broadcast %cst : f32 to vector<24x512xf32>
    %3 = vector.extract_strided_slice %0 {offsets = [0, 0], sizes = [24, 1], strides = [1, 1]} : vector<24x16xi32> to vector<24x1xi32>
    %4 = vector.broadcast %3 : vector<24x1xi32> to vector<24x512xi32>
    %5 = vector.broadcast %1 : vector<1x512xi32> to vector<24x512xi32>
    %6 = arith.cmpi eq, %4, %5 : vector<24x512xi32>
    %cst_1 = arith.constant 1.000000e+00 : f32
    %cst_2 = arith.constant 0.000000e+00 : f32
    %7 = vector.broadcast %cst_1 : f32 to vector<24x512xf32>
    %8 = vector.broadcast %cst_2 : f32 to vector<24x512xf32>
    %9 = arith.select %6, %7, %8 : vector<24x512xi1>, vector<24x512xf32>
    %10 = arith.addf %2, %9 : vector<24x512xf32>
    %11 = vector.extract_strided_slice %0 {offsets = [0, 1], sizes = [24, 1], strides = [1, 1]} : vector<24x16xi32> to vector<24x1xi32>
    %12 = vector.broadcast %11 : vector<24x1xi32> to vector<24x512xi32>
    %13 = vector.broadcast %1 : vector<1x512xi32> to vector<24x512xi32>
    %14 = arith.cmpi eq, %12, %13 : vector<24x512xi32>
    %cst_3 = arith.constant 1.000000e+00 : f32
    %cst_4 = arith.constant 0.000000e+00 : f32
    %15 = vector.broadcast %cst_3 : f32 to vector<24x512xf32>
    %16 = vector.broadcast %cst_4 : f32 to vector<24x512xf32>
    %17 = arith.select %14, %15, %16 : vector<24x512xi1>, vector<24x512xf32>
    %18 = arith.addf %10, %17 : vector<24x512xf32>
    %19 = vector.extract_strided_slice %0 {offsets = [0, 2], sizes = [24, 1], strides = [1, 1]} : vector<24x16xi32> to vector<24x1xi32>
    %20 = vector.broadcast %19 : vector<24x1xi32> to vector<24x512xi32>
    %21 = vector.broadcast %1 : vector<1x512xi32> to vector<24x512xi32>
    %22 = arith.cmpi eq, %20, %21 : vector<24x512xi32>
    %cst_5 = arith.constant 1.000000e+00 : f32
    %cst_6 = arith.constant 0.000000e+00 : f32
    %23 = vector.broadcast %cst_5 : f32 to vector<24x512xf32>
    %24 = vector.broadcast %cst_6 : f32 to vector<24x512xf32>
    %25 = arith.select %22, %23, %24 : vector<24x512xi1>, vector<24x512xf32>
    %26 = arith.addf %18, %25 : vector<24x512xf32>
    %27 = vector.extract_strided_slice %0 {offsets = [0, 3], sizes = [24, 1], strides = [1, 1]} : vector<24x16xi32> to vector<24x1xi32>
    %28 = vector.broadcast %27 : vector<24x1xi32> to vector<24x512xi32>
    %29 = vector.broadcast %1 : vector<1x512xi32> to vector<24x512xi32>
    %30 = arith.cmpi eq, %28, %29 : vector<24x512xi32>
    %cst_7 = arith.constant 1.000000e+00 : f32
    %cst_8 = arith.constant 0.000000e+00 : f32
    %31 = vector.broadcast %cst_7 : f32 to vector<24x512xf32>
    %32 = vector.broadcast %cst_8 : f32 to vector<24x512xf32>
    %33 = arith.select %30, %31, %32 : vector<24x512xi1>, vector<24x512xf32>
    %34 = arith.addf %26, %33 : vector<24x512xf32>
    %35 = vector.extract_strided_slice %0 {offsets = [0, 4], sizes = [24, 1], strides = [1, 1]} : vector<24x16xi32> to vector<24x1xi32>
    %36 = vector.broadcast %35 : vector<24x1xi32> to vector<24x512xi32>
    %37 = vector.broadcast %1 : vector<1x512xi32> to vector<24x512xi32>
    %38 = arith.cmpi eq, %36, %37 : vector<24x512xi32>
    %cst_9 = arith.constant 1.000000e+00 : f32
    %cst_10 = arith.constant 0.000000e+00 : f32
    %39 = vector.broadcast %cst_9 : f32 to vector<24x512xf32>
    %40 = vector.broadcast %cst_10 : f32 to vector<24x512xf32>
    %41 = arith.select %38, %39, %40 : vector<24x512xi1>, vector<24x512xf32>
    %42 = arith.addf %34, %41 : vector<24x512xf32>
    %43 = vector.extract_strided_slice %0 {offsets = [0, 5], sizes = [24, 1], strides = [1, 1]} : vector<24x16xi32> to vector<24x1xi32>
    %44 = vector.broadcast %43 : vector<24x1xi32> to vector<24x512xi32>
    %45 = vector.broadcast %1 : vector<1x512xi32> to vector<24x512xi32>
    %46 = arith.cmpi eq, %44, %45 : vector<24x512xi32>
    %cst_11 = arith.constant 1.000000e+00 : f32
    %cst_12 = arith.constant 0.000000e+00 : f32
    %47 = vector.broadcast %cst_11 : f32 to vector<24x512xf32>
    %48 = vector.broadcast %cst_12 : f32 to vector<24x512xf32>
    %49 = arith.select %46, %47, %48 : vector<24x512xi1>, vector<24x512xf32>
    %50 = arith.addf %42, %49 : vector<24x512xf32>
    %51 = vector.extract_strided_slice %0 {offsets = [0, 6], sizes = [24, 1], strides = [1, 1]} : vector<24x16xi32> to vector<24x1xi32>
    %52 = vector.broadcast %51 : vector<24x1xi32> to vector<24x512xi32>
    %53 = vector.broadcast %1 : vector<1x512xi32> to vector<24x512xi32>
    %54 = arith.cmpi eq, %52, %53 : vector<24x512xi32>
    %cst_13 = arith.constant 1.000000e+00 : f32
    %cst_14 = arith.constant 0.000000e+00 : f32
    %55 = vector.broadcast %cst_13 : f32 to vector<24x512xf32>
    %56 = vector.broadcast %cst_14 : f32 to vector<24x512xf32>
    %57 = arith.select %54, %55, %56 : vector<24x512xi1>, vector<24x512xf32>
    %58 = arith.addf %50, %57 : vector<24x512xf32>
    %59 = vector.extract_strided_slice %0 {offsets = [0, 7], sizes = [24, 1], strides = [1, 1]} : vector<24x16xi32> to vector<24x1xi32>
    %60 = vector.broadcast %59 : vector<24x1xi32> to vector<24x512xi32>
    %61 = vector.broadcast %1 : vector<1x512xi32> to vector<24x512xi32>
    %62 = arith.cmpi eq, %60, %61 : vector<24x512xi32>
    %cst_15 = arith.constant 1.000000e+00 : f32
    %cst_16 = arith.constant 0.000000e+00 : f32
    %63 = vector.broadcast %cst_15 : f32 to vector<24x512xf32>
    %64 = vector.broadcast %cst_16 : f32 to vector<24x512xf32>
    %65 = arith.select %62, %63, %64 : vector<24x512xi1>, vector<24x512xf32>
    %66 = arith.addf %58, %65 : vector<24x512xf32>
    %67 = vector.extract_strided_slice %0 {offsets = [0, 8], sizes = [24, 1], strides = [1, 1]} : vector<24x16xi32> to vector<24x1xi32>
    %68 = vector.broadcast %67 : vector<24x1xi32> to vector<24x512xi32>
    %69 = vector.broadcast %1 : vector<1x512xi32> to vector<24x512xi32>
    %70 = arith.cmpi eq, %68, %69 : vector<24x512xi32>
    %cst_17 = arith.constant 1.000000e+00 : f32
    %cst_18 = arith.constant 0.000000e+00 : f32
    %71 = vector.broadcast %cst_17 : f32 to vector<24x512xf32>
    %72 = vector.broadcast %cst_18 : f32 to vector<24x512xf32>
    %73 = arith.select %70, %71, %72 : vector<24x512xi1>, vector<24x512xf32>
    %74 = arith.addf %66, %73 : vector<24x512xf32>
    %75 = vector.extract_strided_slice %0 {offsets = [0, 9], sizes = [24, 1], strides = [1, 1]} : vector<24x16xi32> to vector<24x1xi32>
    %76 = vector.broadcast %75 : vector<24x1xi32> to vector<24x512xi32>
    %77 = vector.broadcast %1 : vector<1x512xi32> to vector<24x512xi32>
    %78 = arith.cmpi eq, %76, %77 : vector<24x512xi32>
    %cst_19 = arith.constant 1.000000e+00 : f32
    %cst_20 = arith.constant 0.000000e+00 : f32
    %79 = vector.broadcast %cst_19 : f32 to vector<24x512xf32>
    %80 = vector.broadcast %cst_20 : f32 to vector<24x512xf32>
    %81 = arith.select %78, %79, %80 : vector<24x512xi1>, vector<24x512xf32>
    %82 = arith.addf %74, %81 : vector<24x512xf32>
    %83 = vector.extract_strided_slice %0 {offsets = [0, 10], sizes = [24, 1], strides = [1, 1]} : vector<24x16xi32> to vector<24x1xi32>
    %84 = vector.broadcast %83 : vector<24x1xi32> to vector<24x512xi32>
    %85 = vector.broadcast %1 : vector<1x512xi32> to vector<24x512xi32>
    %86 = arith.cmpi eq, %84, %85 : vector<24x512xi32>
    %cst_21 = arith.constant 1.000000e+00 : f32
    %cst_22 = arith.constant 0.000000e+00 : f32
    %87 = vector.broadcast %cst_21 : f32 to vector<24x512xf32>
    %88 = vector.broadcast %cst_22 : f32 to vector<24x512xf32>
    %89 = arith.select %86, %87, %88 : vector<24x512xi1>, vector<24x512xf32>
    %90 = arith.addf %82, %89 : vector<24x512xf32>
    %91 = vector.extract_strided_slice %0 {offsets = [0, 11], sizes = [24, 1], strides = [1, 1]} : vector<24x16xi32> to vector<24x1xi32>
    %92 = vector.broadcast %91 : vector<24x1xi32> to vector<24x512xi32>
    %93 = vector.broadcast %1 : vector<1x512xi32> to vector<24x512xi32>
    %94 = arith.cmpi eq, %92, %93 : vector<24x512xi32>
    %cst_23 = arith.constant 1.000000e+00 : f32
    %cst_24 = arith.constant 0.000000e+00 : f32
    %95 = vector.broadcast %cst_23 : f32 to vector<24x512xf32>
    %96 = vector.broadcast %cst_24 : f32 to vector<24x512xf32>
    %97 = arith.select %94, %95, %96 : vector<24x512xi1>, vector<24x512xf32>
    %98 = arith.addf %90, %97 : vector<24x512xf32>
    %99 = vector.extract_strided_slice %0 {offsets = [0, 12], sizes = [24, 1], strides = [1, 1]} : vector<24x16xi32> to vector<24x1xi32>
    %100 = vector.broadcast %99 : vector<24x1xi32> to vector<24x512xi32>
    %101 = vector.broadcast %1 : vector<1x512xi32> to vector<24x512xi32>
    %102 = arith.cmpi eq, %100, %101 : vector<24x512xi32>
    %cst_25 = arith.constant 1.000000e+00 : f32
    %cst_26 = arith.constant 0.000000e+00 : f32
    %103 = vector.broadcast %cst_25 : f32 to vector<24x512xf32>
    %104 = vector.broadcast %cst_26 : f32 to vector<24x512xf32>
    %105 = arith.select %102, %103, %104 : vector<24x512xi1>, vector<24x512xf32>
    %106 = arith.addf %98, %105 : vector<24x512xf32>
    %107 = vector.extract_strided_slice %0 {offsets = [0, 13], sizes = [24, 1], strides = [1, 1]} : vector<24x16xi32> to vector<24x1xi32>
    %108 = vector.broadcast %107 : vector<24x1xi32> to vector<24x512xi32>
    %109 = vector.broadcast %1 : vector<1x512xi32> to vector<24x512xi32>
    %110 = arith.cmpi eq, %108, %109 : vector<24x512xi32>
    %cst_27 = arith.constant 1.000000e+00 : f32
    %cst_28 = arith.constant 0.000000e+00 : f32
    %111 = vector.broadcast %cst_27 : f32 to vector<24x512xf32>
    %112 = vector.broadcast %cst_28 : f32 to vector<24x512xf32>
    %113 = arith.select %110, %111, %112 : vector<24x512xi1>, vector<24x512xf32>
    %114 = arith.addf %106, %113 : vector<24x512xf32>
    %115 = vector.extract_strided_slice %0 {offsets = [0, 14], sizes = [24, 1], strides = [1, 1]} : vector<24x16xi32> to vector<24x1xi32>
    %116 = vector.broadcast %115 : vector<24x1xi32> to vector<24x512xi32>
    %117 = vector.broadcast %1 : vector<1x512xi32> to vector<24x512xi32>
    %118 = arith.cmpi eq, %116, %117 : vector<24x512xi32>
    %cst_29 = arith.constant 1.000000e+00 : f32
    %cst_30 = arith.constant 0.000000e+00 : f32
    %119 = vector.broadcast %cst_29 : f32 to vector<24x512xf32>
    %120 = vector.broadcast %cst_30 : f32 to vector<24x512xf32>
    %121 = arith.select %118, %119, %120 : vector<24x512xi1>, vector<24x512xf32>
    %122 = arith.addf %114, %121 : vector<24x512xf32>
    %123 = vector.extract_strided_slice %0 {offsets = [0, 15], sizes = [24, 1], strides = [1, 1]} : vector<24x16xi32> to vector<24x1xi32>
    %124 = vector.broadcast %123 : vector<24x1xi32> to vector<24x512xi32>
    %125 = vector.broadcast %1 : vector<1x512xi32> to vector<24x512xi32>
    %126 = arith.cmpi eq, %124, %125 : vector<24x512xi32>
    %cst_31 = arith.constant 1.000000e+00 : f32
    %cst_32 = arith.constant 0.000000e+00 : f32
    %127 = vector.broadcast %cst_31 : f32 to vector<24x512xf32>
    %128 = vector.broadcast %cst_32 : f32 to vector<24x512xf32>
    %129 = arith.select %126, %127, %128 : vector<24x512xi1>, vector<24x512xf32>
    %130 = arith.addf %122, %129 : vector<24x512xf32>
    %c0_33 = arith.constant 0 : index
    %c0_34 = arith.constant 0 : index
    %131 = vector.load %arg2[%c0_33, %c0_34] : memref<512x128xf32, #tpu.memory_space<vmem>>, vector<512x128xf32>
    %cst_35 = arith.constant dense<0.000000e+00> : vector<24x128xf32>
    %132 = tpu.matmul %130, %131, %cst_35 {dimension_numbers = #tpu.dot_dimension_numbers<[1], [0], [0], [1], [0, 0, 1, 1], [], []>} : vector<24x512xf32>, vector<512x128xf32>, vector<24x128xf32> -> vector<24x128xf32>
    %c0_36 = arith.constant 0 : index
    %c0_37 = arith.constant 0 : index
    %133 = vector.load %arg3[%c0_36, %c0_37] : memref<1x128xf32, #tpu.memory_space<vmem>>, vector<1x128xf32>
    %134 = vector.broadcast %133 : vector<1x128xf32> to vector<24x128xf32>
    %135 = arith.addf %132, %134 : vector<24x128xf32>
    %cst_38 = arith.constant 0.000000e+00 : f32
    %136 = vector.broadcast %cst_38 : f32 to vector<24x128xf32>
    %137 = arith.maximumf %135, %136 : vector<24x128xf32>
    %c0_39 = arith.constant 0 : index
    %c0_40 = arith.constant 0 : index
    %138 = vector.load %arg4[%c0_39, %c0_40] : memref<128x128xf32, #tpu.memory_space<vmem>>, vector<128x128xf32>
    %cst_41 = arith.constant dense<0.000000e+00> : vector<24x128xf32>
    %139 = tpu.matmul %137, %138, %cst_41 {dimension_numbers = #tpu.dot_dimension_numbers<[1], [0], [0], [1], [0, 0, 1, 1], [], []>} : vector<24x128xf32>, vector<128x128xf32>, vector<24x128xf32> -> vector<24x128xf32>
    %c0_42 = arith.constant 0 : index
    %c0_43 = arith.constant 0 : index
    %140 = vector.load %arg5[%c0_42, %c0_43] : memref<1x128xf32, #tpu.memory_space<vmem>>, vector<1x128xf32>
    %141 = vector.broadcast %140 : vector<1x128xf32> to vector<24x128xf32>
    %142 = arith.addf %139, %141 : vector<24x128xf32>
    %c0_44 = arith.constant 0 : index
    %c0_45 = arith.constant 0 : index
    %143 = vector.load %arg6[%c0_44, %c0_45] : memref<24x128xf32, #tpu.memory_space<vmem>>, vector<24x128xf32>
    tpu.vector_store %arg6[%c0_44, %c0_45], %142 {strides = array<i32>} : memref<24x128xf32, #tpu.memory_space<vmem>>, vector<24x128xf32>,
    return
  }
  func.func @transform_0(%arg0: i32) -> (i32, i32) {
    %c0_i32 = arith.constant 0 : i32
    %c0_i32_0 = arith.constant 0 : i32
    return %arg0, %c0_i32 : i32, i32
  }
  func.func @transform_1(%arg0: i32) -> (i32, i32) {
    %c0_i32 = arith.constant 0 : i32
    %c0_i32_0 = arith.constant 0 : i32
    %c0_i32_1 = arith.constant 0 : i32
    return %c0_i32, %c0_i32_0 : i32, i32
  }
  func.func @transform_2(%arg0: i32) -> (i32, i32) {
    %c0_i32 = arith.constant 0 : i32
    %c0_i32_0 = arith.constant 0 : i32
    %c0_i32_1 = arith.constant 0 : i32
    return %c0_i32, %c0_i32_0 : i32, i32
  }
  func.func @transform_3(%arg0: i32) -> (i32, i32) {
    %c0_i32 = arith.constant 0 : i32
    %c0_i32_0 = arith.constant 0 : i32
    %c0_i32_1 = arith.constant 0 : i32
    return %c0_i32, %c0_i32_0 : i32, i32
  }
  func.func @transform_4(%arg0: i32) -> (i32, i32) {
    %c0_i32 = arith.constant 0 : i32
    %c0_i32_0 = arith.constant 0 : i32
    %c0_i32_1 = arith.constant 0 : i32
    return %c0_i32, %c0_i32_0 : i32, i32
  }
  func.func @transform_5(%arg0: i32) -> (i32, i32) {
    %c0_i32 = arith.constant 0 : i32
    %c0_i32_0 = arith.constant 0 : i32
    return %arg0, %c0_i32 : i32, i32
  }
}

</mosaic_0001>

<bundles_post_ra>
// kernel: tpu_custom_call.1
= control target key start
LH: loop header
LB: loop body
LE: loop exit
PB: predicated region body
PF: predicated region fallthrough
CT: control target
= control target key end

     0   :  { %10 = vsyncpa [#allocation3], 0  ;;  %s2508_s0 = inlined_call_operand.vmem [shape: s32[24,16], index: 0, kind: input, shape index: {}]   ;;  %s2509_s1 = inlined_call_operand.hbm [shape: f32[512,128], index: 1, kind: input, shape index: {}]   ;;  %s2510_s2 = inlined_call_operand.vmem [shape: f32[1,128], index: 2, kind: input, shape index: {}]   ;;  %s2511_s3 = inlined_call_operand.hbm [shape: f32[128,128], index: 3, kind: input, shape index: {}]   ;;  %s2512_s4 = inlined_call_operand.vmem [shape: f32[1,128], index: 4, kind: input, shape index: {}]   ;;  %s2513_s5 = inlined_call_operand.hbm [shape: f32[24,128], index: 5, kind: output, shape index: {}]  }
   0x1   :  { %11 = vsyncpa [#allocation6], 0 }
   0x2   :  { %12 = vsyncpa [#allocation4], 0  ;;  %s1525_s18 = smov [#allocation2]   ;;  %s1453_s22 = scalar_lea.hbm %s2509_s1, 8192 }
   0x3   :  { %s20_s19 = sshll.u32 %s1525_s18, 4  ;;  %p1454_p0 = scmp.ne.s32.totalorder %s2509_s1, %s1453_s22  ;;  %s21_s19 = int_to_ptr.vmem [resolvable:$true] %s20_s19 }
   0x4   :  { %p1457_p1 = scmp.lt.u32.totalorder %s1453_s22, %s2509_s1 }
   0x6   :  { %p1459_p2 = pnand %p1457_p1, %p1454_p0 }
   0x8   :  { %1462 = shalt.err (!%p1459_p2)
}
   0x9   :  { %s1463_s27 = scalar_lea.vmem %s21_s19, 8192  ;;  %p1468_p4 = scmp.lt.s32.totalorder %s21_s19, %s21_s19 }
   0xa   :  { %p1464_p3 = scmp.ne.s32.totalorder %s21_s19, %s1463_s27  ;;  %p1469_p5 = scmp.lt.s32.totalorder %s1463_s27, %s1463_s27 }
   0xc   :  { %p1470_p6 = por %p1469_p5, %p1468_p4 }
   0xe   :  { %p1471_p7 = pnand %p1470_p6, %p1464_p3 }
  0x10   :  { %1474 = shalt.err (!%p1471_p7)
}
  0x11   :  { %s1526_s28 = smov 128   ;;  %s1527_s29 = smov 8  }
  0x12   :  { %26 = dma.hbm_to_vmem [thread:$0]  %s2509_s1, 8192, %s21_s19, [#allocation3], %s1526_s28, %s1526_s28, %s1527_s29  }
  0x13   :  { %s1528_s7 = smov [#allocation5]   ;;  %s1475_s11 = scalar_lea.hbm %s2511_s3, 2048 }
  0x14   :  { %s34_s8 = sshll.u32 %s1528_s7, 4  ;;  %p1476_p8 = scmp.ne.s32.totalorder %s2511_s3, %s1475_s11  ;;  %s35_s8 = int_to_ptr.vmem [resolvable:$true] %s34_s8 }
  0x15   :  { %p1479_p9 = scmp.lt.u32.totalorder %s1475_s11, %s2511_s3 }
  0x17   :  { %p1481_p10 = pnand %p1479_p9, %p1476_p8 }
  0x19   :  { %1484 = shalt.err (!%p1481_p10)
}
  0x1a   :  { %s1485_s16 = scalar_lea.vmem %s35_s8, 2048  ;;  %p1490_p12 = scmp.lt.s32.totalorder %s35_s8, %s35_s8 }
  0x1b   :  { %p1486_p11 = scmp.ne.s32.totalorder %s35_s8, %s1485_s16  ;;  %p1491_p13 = scmp.lt.s32.totalorder %s1485_s16, %s1485_s16 }
  0x1d   :  { %p1492_p0 = por %p1491_p13, %p1490_p12 }
  0x1f   :  { %p1493_p1 = pnand %p1492_p0, %p1486_p11 }
  0x21   :  { %1496 = shalt.err (!%p1493_p1)
}
  0x22   :  { %40 = dma.hbm_to_vmem [thread:$0]  %s2511_s3, 2048, %s35_s8, [#allocation6], %s1526_s28, %s1526_s28, %s1527_s29  }
  0x23   :  { %1519 = dma.done.wait [#allocation3], 8192  }
  0x24   :  { %1520 = vsyncadd [#allocation3], 4294959104 }
  0x25   :  { %1521 = dma.done.wait [#allocation6], 2048  }
  0x26   :  { %1522 = vsyncadd [#allocation6], 4294965248  ;;  %v1529_v0 = vmov 2   ;;  %v1530_v1 = vmov 1   ;;  %v1612_v2 = vld [vmem:[%s2508_s0] sm:$0xff]  ;;  %v1619_v3 = vld [vmem:[%s2508_s0 + $0x8] sm:$0xff] }
  0x27   :  { %1408 = vset.pattern.permute.xlu1 %v1529_v0  ;;  %1407 = vset.pattern.permute.xlu0 %v1530_v1  ;;  %v1531_v4 = vmov 0   ;;  %v1532_v5 = vmov 3   ;;  %v1628_v6 = vld [vmem:[%s2508_s0 + $0x10] sm:$0xff]  ;;  %v1533_v7 = vmov 5   ;;  %v1534_v8 = vmov 4   ;;  %v793_v16 = vld [vmem:[#allocation2 + $0x80] sm:$0xff] }
  0x28   :  { %148 = vperm.xlu1 %1408, %v1612_v2   ;;  %103 = vperm.xlu0 %1407, %v1612_v2   ;;  %v1535_v9 = vmov 6   ;;  %v1536_v10 = vmov 7   ;;  %v1537_v11 = vmov 8   ;;  %v1538_v12 = vmov 9   ;;  %v794_v17 = vld [vmem:[#allocation2 + $0x88] sm:$0xff]  ;;  %v825_v18 = vld [vmem:[#allocation2 + $0x180] sm:$0xff] }
  0x29   :  { %v1539_v13 = vmov 10   ;;  %v1540_v14 = vmov 11   ;;  %v1541_v15 = vmov 12   ;;  %v1279_v19 = vpack.c.bf16 %v794_v17, %v793_v16  ;;  %v826_v20 = vld [vmem:[#allocation2 + $0x188] sm:$0xff]  ;;  %v777_v21 = vld [vmem:[#allocation2] sm:$0xff]  ;;  %v795_v29 = vld [vmem:[#allocation2 + $0x90] sm:$0xff] }
  0x2a   :  { %v778_v22 = vld [vmem:[#allocation2 + $0x8] sm:$0xff]  ;;  %v1311_v23 = vpack.c.bf16 %v826_v20, %v825_v18  ;;  %v809_v25 = vld [vmem:[#allocation2 + $0x100] sm:$0xff]  ;;  %v1542_v28 = vmov 14   ;;  %v796_v30 = vld [vmem:[#allocation2 + $0x98] sm:$0xff]  ;;  %v1543_v41 = vmov 15   ;;  %v1544_v54 = vmov 13  }
  0x2b   :  { %v1281_v24 = vpack.c.bf16 %v778_v22, %v777_v21  ;;  %v810_v26 = vld [vmem:[#allocation2 + $0x108] sm:$0xff]  ;;  %1280 = vmatprep.subr.bf16.mxu0 %v1279_v19  ;;  %v827_v31 = vld [vmem:[#allocation2 + $0x190] sm:$0xff]  ;;  %v1283_v32 = vpack.c.bf16 %v796_v30, %v795_v29  ;;  %v828_v33 = vld [vmem:[#allocation2 + $0x198] sm:$0xff]  ;;  %s1548_s25 = smov [#allocation7]  }
  0x2c   :  { %1409 = vset.pattern.permute.xlu1 %v1531_v4  ;;  %1411 = vset.pattern.permute.xlu0 %v1532_v5  ;;  %v1313_v27 = vpack.c.bf16 %v810_v26, %v809_v25  ;;  %v779_v34 = vld [vmem:[#allocation2 + $0x10] sm:$0xff]  ;;  %v780_v35 = vld [vmem:[#allocation2 + $0x18] sm:$0xff]  ;;  %v1315_v36 = vpack.c.bf16 %v828_v33, %v827_v31  ;;  %v797_v42 = vld [vmem:[#allocation2 + $0xa0] sm:$0xff]  ;;  %s1122_s26 = sshll.u32 %s1548_s25, 4  ;;  %s1123_s26 = int_to_ptr.vmem [resolvable:$true] %s1122_s26 }
  0x2d   :  { %61 = vperm.xlu1 %1409, %v1619_v3   ;;  %193 = vperm.xlu0 %1411, %v1612_v2   ;;  %v1285_v37 = vpack.c.bf16 %v780_v35, %v779_v34  ;;  %v811_v38 = vld [vmem:[#allocation2 + $0x110] sm:$0xff]  ;;  %v812_v39 = vld [vmem:[#allocation2 + $0x118] sm:$0xff]  ;;  %v798_v43 = vld [vmem:[#allocation2 + $0xa8] sm:$0xff]  ;;  %s1497_s27 = scalar_lea.vmem %s1123_s26, 384  ;;  %p1502_p3 = scmp.lt.s32.totalorder %s1123_s26, %s1123_s26 }
  0x2e   :  { %1312 = vmatprep.subr.bf16.mxu1 %v1311_v23  ;;  %1282 = vmatpush3.bf16.msra.mxu0 %v1281_v24  ;;  %v1317_v40 = vpack.c.bf16 %v812_v39, %v811_v38  ;;  %v829_v44 = vld [vmem:[#allocation2 + $0x1a0] sm:$0xff]  ;;  %v1287_v45 = vpack.c.bf16 %v798_v43, %v797_v42  ;;  %v830_v46 = vld [vmem:[#allocation2 + $0x1a8] sm:$0xff]  ;;  %v799_v55 = vld [vmem:[#allocation2 + $0xb0] sm:$0xff]  ;;  %p1498_p2 = scmp.ne.s32.totalorder %s1123_s26, %s1497_s27  ;;  %p1503_p4 = scmp.lt.s32.totalorder %s1497_s27, %s1497_s27 }
  0x2f   :  { %1314 = vmatpush3.bf16.msra.mxu1 %v1313_v27  ;;  %1284 = vmatprep.subr.bf16.mxu0 %v1283_v32  ;;  %v1319_v47 = vpack.c.bf16 %v830_v46, %v829_v44  ;;  %v781_v48 = vld [vmem:[#allocation2 + $0x20] sm:$0xff]  ;;  %v782_v49 = vld [vmem:[#allocation2 + $0x28] sm:$0xff]  ;;  %v800_v56 = vld [vmem:[#allocation2 + $0xb8] sm:$0xff] }
  0x30   :  { %1316 = vmatprep.subr.bf16.mxu1 %v1315_v36  ;;  %v813_v50 = vld [vmem:[#allocation2 + $0x120] sm:$0xff]  ;;  %v1289_v51 = vpack.c.bf16 %v782_v49, %v781_v48  ;;  %v814_v52 = vld [vmem:[#allocation2 + $0x128] sm:$0xff]  ;;  %v831_v57 = vld [vmem:[#allocation2 + $0x1b0] sm:$0xff]  ;;  %v1291_v58 = vpack.c.bf16 %v800_v56, %v799_v55  ;;  %p1504_p5 = por %p1503_p4, %p1502_p3 }
  0x31   :  { %1410 = vset.pattern.permute.xlu1 %v1530_v1  ;;  %1412 = vset.pattern.permute.xlu0 %v1531_v4  ;;  %v1321_v53 = vpack.c.bf16 %v814_v52, %v813_v50  ;;  %v832_v59 = vld [vmem:[#allocation2 + $0x1b8] sm:$0xff]  ;;  %v783_v60 = vld [vmem:[#allocation2 + $0x30] sm:$0xff]  ;;  %v834_v16 = vld [vmem:[#allocation2 + $0x1c8] sm:$0xff] }
  0x32   :  { %106 = vperm.xlu1 %1410, %v1619_v3   ;;  %58 = vperm.xlu0 %1412, %v1612_v2   ;;  %v784_v61 = vld [vmem:[#allocation2 + $0x38] sm:$0xff]  ;;  %v1323_v62 = vpack.c.bf16 %v832_v59, %v831_v57  ;;  %v785_v17 = vld [vmem:[#allocation2 + $0x40] sm:$0xff]  ;;  %v786_v18 = vld [vmem:[#allocation2 + $0x48] sm:$0xff]  ;;  %p1505_p6 = pnand %p1504_p5, %p1498_p2 }
  0x33   :  { %1286 = vmatpush3.bf16.msra.mxu0 %v1285_v37  ;;  %1318 = vmatpush3.bf16.msra.mxu1 %v1317_v40  ;;  %v1293_v63 = vpack.c.bf16 %v784_v61, %v783_v60  ;;  %v1297_v20 = vpack.c.bf16 %v786_v18, %v785_v17  ;;  %v817_v21 = vld [vmem:[#allocation2 + $0x140] sm:$0xff]  ;;  %v818_v22 = vld [vmem:[#allocation2 + $0x148] sm:$0xff]  ;;  %v803_v24 = vld [vmem:[#allocation2 + $0xd0] sm:$0xff] }
  0x34   :  { %1288 = vmatprep.subr.bf16.mxu0 %v1287_v45  ;;  %1320 = vmatprep.subr.bf16.mxu1 %v1319_v47  ;;  %v1329_v23 = vpack.c.bf16 %v818_v22, %v817_v21  ;;  %v804_v25 = vld [vmem:[#allocation2 + $0xd8] sm:$0xff]  ;;  %v835_v26 = vld [vmem:[#allocation2 + $0x1d0] sm:$0xff]  ;;  %v805_v36 = vld [vmem:[#allocation2 + $0xe0] sm:$0xff] }
  0x35   :  { %v1299_v27 = vpack.c.bf16 %v804_v25, %v803_v24  ;;  %v836_v29 = vld [vmem:[#allocation2 + $0x1d8] sm:$0xff]  ;;  %v787_v30 = vld [vmem:[#allocation2 + $0x50] sm:$0xff]  ;;  %v806_v37 = vld [vmem:[#allocation2 + $0xe8] sm:$0xff] }
  0x36   :  { %1413 = vset.pattern.permute.xlu1 %v1529_v0  ;;  %64 = vperm.xlu0 %1412, %v1628_v6   ;;  %v1331_v31 = vpack.c.bf16 %v836_v29, %v835_v26  ;;  %v819_v33 = vld [vmem:[#allocation2 + $0x150] sm:$0xff]  ;;  %v820_v34 = vld [vmem:[#allocation2 + $0x158] sm:$0xff]  ;;  %v837_v38 = vld [vmem:[#allocation2 + $0x1e0] sm:$0xff]  ;;  %v1303_v39 = vpack.c.bf16 %v806_v37, %v805_v36 }
  0x37   :  { %151 = vperm.xlu1 %1413, %v1619_v3   ;;  %1290 = vmatpush3.bf16.msra.mxu0 %v1289_v51  ;;  %v1333_v35 = vpack.c.bf16 %v820_v34, %v819_v33  ;;  %v838_v40 = vld [vmem:[#allocation2 + $0x1e8] sm:$0xff]  ;;  %v789_v42 = vld [vmem:[#allocation2 + $0x60] sm:$0xff]  ;;  %v807_v48 = vld [vmem:[#allocation2 + $0xf0] sm:$0xff] }
  0x38   :  { %1322 = vmatpush3.bf16.msra.mxu1 %v1321_v53  ;;  %1292 = vmatprep.subr.bf16.mxu0 %v1291_v58  ;;  %v790_v43 = vld [vmem:[#allocation2 + $0x68] sm:$0xff]  ;;  %v1335_v44 = vpack.c.bf16 %v838_v40, %v837_v38  ;;  %v821_v46 = vld [vmem:[#allocation2 + $0x160] sm:$0xff]  ;;  %v808_v50 = vld [vmem:[#allocation2 + $0xf8] sm:$0xff] }
  0x39   :  { %1324 = vmatprep.subr.bf16.mxu1 %v1323_v62  ;;  %v1305_v45 = vpack.c.bf16 %v790_v43, %v789_v42  ;;  %v822_v47 = vld [vmem:[#allocation2 + $0x168] sm:$0xff]  ;;  %v839_v51 = vld [vmem:[#allocation2 + $0x1f0] sm:$0xff]  ;;  %v840_v52 = vld [vmem:[#allocation2 + $0x1f8] sm:$0xff]  ;;  %v1307_v53 = vpack.c.bf16 %v808_v50, %v807_v48 }
  0x3a   :  { %1417 = vset.pattern.permute.xlu0 %v1533_v7  ;;  %v1337_v49 = vpack.c.bf16 %v822_v47, %v821_v46  ;;  %v1339_v55 = vpack.c.bf16 %v840_v52, %v839_v51  ;;  %v791_v56 = vld [vmem:[#allocation2 + $0x70] sm:$0xff]  ;;  %v792_v57 = vld [vmem:[#allocation2 + $0x78] sm:$0xff] }
  0x3b   :  { %1414 = vset.pattern.permute.xlu1 %v1534_v8  ;;  %283 = vperm.xlu0 %1417, %v1612_v2   ;;  %v823_v58 = vld [vmem:[#allocation2 + $0x170] sm:$0xff]  ;;  %v1309_v59 = vpack.c.bf16 %v792_v57, %v791_v56  ;;  %v824_v60 = vld [vmem:[#allocation2 + $0x178] sm:$0xff] }
  0x3c   :  { %238 = vperm.xlu1 %1414, %v1612_v2   ;;  %1294 = vmatpush3.bf16.msra.mxu0 %v1293_v63  ;;  %v1341_v61 = vpack.c.bf16 %v824_v60, %v823_v58 }
  0x3f   :  { %1420 = vset.pattern.permute.xlu0 %v1535_v9 }
  0x40   :  { %1415 = vset.pattern.permute.xlu1 %v1530_v1  ;;  %328 = vperm.xlu0 %1420, %v1612_v2   ;;  %v816_v1 = vld [vmem:[#allocation2 + $0x138] sm:$0xff] }
  0x41   :  { %109 = vperm.xlu1 %1415, %v1628_v6  }
  0x44   :  { %1423 = vset.pattern.permute.xlu0 %v1536_v10 }
  0x45   :  { %1416 = vset.pattern.permute.xlu1 %v1532_v5  ;;  %373 = vperm.xlu0 %1423, %v1612_v2  }
  0x46   :  { %196 = vperm.xlu1 %1416, %v1619_v3  }
  0x49   :  { %1426 = vset.pattern.permute.xlu0 %v1537_v11 }
  0x4a   :  { %1418 = vset.pattern.permute.xlu1 %v1529_v0  ;;  %418 = vperm.xlu0 %1426, %v1612_v2   ;;  %v815_v0 = vld [vmem:[#allocation2 + $0x130] sm:$0xff] }
  0x4b   :  { %154 = vperm.xlu1 %1418, %v1628_v6   ;;  %v1325_v4 = vpack.c.bf16 %v816_v1, %v815_v0 }
  0x4d   :  { %1326 = vmatpush3.bf16.msra.mxu1 %v1325_v4 }
  0x4e   :  { %1429 = vset.pattern.permute.xlu0 %v1538_v12 }
  0x4f   :  { %1419 = vset.pattern.permute.xlu1 %v1534_v8  ;;  %463 = vperm.xlu0 %1429, %v1612_v2  }
  0x50   :  { %241 = vperm.xlu1 %1419, %v1619_v3  }
  0x53   :  { %1432 = vset.pattern.permute.xlu0 %v1539_v13 }
  0x54   :  { %1421 = vset.pattern.permute.xlu1 %v1532_v5  ;;  %508 = vperm.xlu0 %1432, %v1612_v2   ;;  %v801_v5 = vld [vmem:[#allocation2 + $0xc0] sm:$0xff] }
  0x55   :  { %199 = vperm.xlu1 %1421, %v1628_v6  }
  0x58   :  { %1435 = vset.pattern.permute.xlu0 %v1540_v14 }
  0x59   :  { %1422 = vset.pattern.permute.xlu1 %v1533_v7  ;;  %553 = vperm.xlu0 %1435, %v1612_v2  }
  0x5a   :  { %286 = vperm.xlu1 %1422, %v1619_v3  }
  0x5d   :  { %1438 = vset.pattern.permute.xlu0 %v1541_v15 }
  0x5e   :  { %1424 = vset.pattern.permute.xlu1 %v1534_v8  ;;  %598 = vperm.xlu0 %1438, %v1612_v2   ;;  %v833_v8 = vld [vmem:[#allocation2 + $0x1c0] sm:$0xff] }
  0x5f   :  { %244 = vperm.xlu1 %1424, %v1628_v6   ;;  %v1327_v19 = vpack.c.bf16 %v834_v16, %v833_v8 }
  0x61   :  { %1328 = vmatprep.subr.bf16.mxu1 %v1327_v19 }
  0x62   :  { %1443 = vset.pattern.permute.xlu0 %v1542_v28  ;;  %1330 = vmatpush3.bf16.msra.mxu1 %v1329_v23 }
  0x63   :  { %1425 = vset.pattern.permute.xlu1 %v1535_v9  ;;  %688 = vperm.xlu0 %1443, %v1612_v2  }
  0x64   :  { %331 = vperm.xlu1 %1425, %v1619_v3   ;;  %1332 = vmatprep.subr.bf16.mxu1 %v1331_v31 }
  0x66   :  { %1334 = vmatpush3.bf16.msra.mxu1 %v1333_v35 }
  0x67   :  { %1446 = vset.pattern.permute.xlu0 %v1543_v41  ;;  %1336 = vmatprep.subr.bf16.mxu1 %v1335_v44 }
  0x68   :  { %1427 = vset.pattern.permute.xlu1 %v1533_v7  ;;  %733 = vperm.xlu0 %1446, %v1612_v2   ;;  %v802_v7 = vld [vmem:[#allocation2 + $0xc8] sm:$0xff] }
  0x69   :  { %289 = vperm.xlu1 %1427, %v1628_v6  }
  0x6a   :  { %1338 = vmatpush3.bf16.msra.mxu1 %v1337_v49 }
  0x6b   :  { %1340 = vmatprep.subr.bf16.mxu1 %v1339_v55 }
  0x6c   :  { %1447 = vset.pattern.permute.xlu0 %v1544_v54 }
  0x6d   :  { %1428 = vset.pattern.permute.xlu1 %v1536_v10  ;;  %643 = vperm.xlu0 %1447, %v1612_v2   ;;  %v1295_v2 = vpack.c.bf16 %v802_v7, %v801_v5 }
  0x6e   :  { %376 = vperm.xlu1 %1428, %v1619_v3   ;;  %1342 = vmatpush3.bf16.msra.mxu1 %v1341_v61 }
  0x6f   :  { %1296 = vmatprep.subr.bf16.mxu0 %v1295_v2 }
  0x70   :  { %1298 = vmatpush3.bf16.msra.mxu0 %v1297_v20 }
  0x71   :  { %649 = vperm.xlu0 %1447, %v1628_v6   ;;  %1300 = vmatprep.subr.bf16.mxu0 %v1299_v27 }
  0x72   :  { %1430 = vset.pattern.permute.xlu1 %v1535_v9  ;;  %v788_v9 = vld [vmem:[#allocation2 + $0x58] sm:$0xff] }
  0x73   :  { %334 = vperm.xlu1 %1430, %v1628_v6   ;;  %v1301_v32 = vpack.c.bf16 %v788_v9, %v787_v30 }
  0x75   :  { %1452 = vset.pattern.permute.xlu0 %v1543_v41  ;;  %1302 = vmatpush3.bf16.msra.mxu0 %v1301_v32 }
  0x76   :  { %739 = vperm.xlu0 %1452, %v1628_v6   ;;  %1304 = vmatprep.subr.bf16.mxu0 %v1303_v39 }
  0x77   :  { %1431 = vset.pattern.permute.xlu1 %v1537_v11 }
  0x78   :  { %421 = vperm.xlu1 %1431, %v1619_v3  }
  0x79   :  { %1306 = vmatpush3.bf16.msra.mxu0 %v1305_v45 }
  0x7a   :  { %1308 = vmatprep.subr.bf16.mxu0 %v1307_v53 }
  0x7c   :  { %1433 = vset.pattern.permute.xlu1 %v1536_v10  ;;  %v52_v10 = vlaneseq }
  0x7d   :  { %379 = vperm.xlu1 %1433, %v1628_v6   ;;  %1310 = vmatpush3.bf16.msra.mxu0 %v1309_v59 }
  0x7e   :  { %v1696_v62 = vand.u32 127, %v52_v10 }
  0x80   :  { %v1704_v63 = vadd.s32 256, %v1696_v62 }
  0x81   :  { %1434 = vset.pattern.permute.xlu1 %v1538_v12 }
  0x82   :  { %466 = vperm.xlu1 %1434, %v1619_v3  }
  0x86   :  { %1436 = vset.pattern.permute.xlu1 %v1537_v11 }
  0x87   :  { %424 = vperm.xlu1 %1436, %v1628_v6  }
  0x8b   :  { %1437 = vset.pattern.permute.xlu1 %v1539_v13 }
  0x8c   :  { %511 = vperm.xlu1 %1437, %v1619_v3  }
  0x90   :  { %1439 = vset.pattern.permute.xlu1 %v1538_v12 }
  0x91   :  { %469 = vperm.xlu1 %1439, %v1628_v6  }
  0x95   :  { %1440 = vset.pattern.permute.xlu1 %v1540_v14 }
  0x96   :  { %556 = vperm.xlu1 %1440, %v1619_v3  }
  0x9a   :  { %1441 = vset.pattern.permute.xlu1 %v1539_v13  ;;  %v1701_v13 = vadd.s32 128, %v1696_v62 }
  0x9b   :  { %514 = vperm.xlu1 %1441, %v1628_v6  }
  0x9f   :  { %1442 = vset.pattern.permute.xlu1 %v1541_v15 }
  0xa0   :  { %601 = vperm.xlu1 %1442, %v1619_v3  }
  0xa4   :  { %1444 = vset.pattern.permute.xlu1 %v1540_v14  ;;  %v1707_v14 = vadd.s32 384, %v1696_v62 }
  0xa5   :  { %559 = vperm.xlu1 %1444, %v1628_v6  }
  0xa7   :  { %v1694_v11 = vpop.permute.xlu1 %148  ;;  %v104_v12 = vpop.permute.xlu0 %103 }
  0xa8   :  { %vm111_vm4 = vcmp.eq.s32.totalorder %v104_v12, %v1696_v62  ;;  %vm112_vm5 = vcmp.eq.s32.totalorder %v104_v12, %v1701_v13  ;;  %vm113_vm6 = vcmp.eq.s32.totalorder %v104_v12, %v1704_v63  ;;  %vm114_vm7 = vcmp.eq.s32.totalorder %v104_v12, %v1707_v14 }
  0xa9   :  { %1445 = vset.pattern.permute.xlu1 %v1544_v54  ;;  %v1545_v54 = vmov 0.0   ;;  %vm156_vm12 = vcmp.eq.s32.totalorder %v1694_v11, %v1696_v62  ;;  %vm157_vm13 = vcmp.eq.s32.totalorder %v1694_v11, %v1701_v13  ;;  %vm158_vm14 = vcmp.eq.s32.totalorder %v1694_v11, %v1704_v63 }
  0xaa   :  { %646 = vperm.xlu1 %1445, %v1619_v3   ;;  %vm159_vm15 = vcmp.eq.s32.totalorder %v1694_v11, %v1707_v14  ;;  %v123_v26 = vsel %vm111_vm4, 1.0, %v1545_v54  ;;  %v124_v27 = vsel %vm112_vm5, 1.0, %v1545_v54  ;;  %v125_v29 = vsel %vm113_vm6, 1.0, %v1545_v54 }
  0xab   :  { %v126_v30 = vsel %vm114_vm7, 1.0, %v1545_v54  ;;  %v168_v47 = vsel %vm156_vm12, 1.0, %v1545_v54  ;;  %v169_v48 = vsel %vm157_vm13, 1.0, %v1545_v54  ;;  %v170_v49 = vsel %vm158_vm14, 1.0, %v1545_v54 }
  0xac   :  { %v62_v0 = vpop.permute.xlu1 %61  ;;  %v1709_v1 = vpop.permute.xlu0 %193 }
  0xad   :  { %vm70_vm0 = vcmp.eq.s32.totalorder %v62_v0, %v1696_v62  ;;  %vm71_vm1 = vcmp.eq.s32.totalorder %v62_v0, %v1701_v13  ;;  %vm72_vm2 = vcmp.eq.s32.totalorder %v62_v0, %v1704_v63  ;;  %vm73_vm3 = vcmp.eq.s32.totalorder %v62_v0, %v1707_v14 }
  0xae   :  { %1448 = vset.pattern.permute.xlu1 %v1541_v15  ;;  %v82_v4 = vsel %vm70_vm0, 1.0, %v1545_v54  ;;  %v83_v5 = vsel %vm71_vm1, 1.0, %v1545_v54  ;;  %v84_v7 = vsel %vm72_vm2, 1.0, %v1545_v54  ;;  %v85_v8 = vsel %vm73_vm3, 1.0, %v1545_v54 }
  0xaf   :  { %604 = vperm.xlu1 %1448, %v1628_v6   ;;  %vm201_vm5 = vcmp.eq.s32.totalorder %v1709_v1, %v1696_v62  ;;  %vm202_vm6 = vcmp.eq.s32.totalorder %v1709_v1, %v1701_v13  ;;  %vm203_vm7 = vcmp.eq.s32.totalorder %v1709_v1, %v1704_v63 }
  0xb0   :  { %v214_v57 = vsel %vm202_vm6, 1.0, %v1545_v54  ;;  %v215_v58 = vsel %vm203_vm7, 1.0, %v1545_v54 }
  0xb1   :  { %v107_v15 = vpop.permute.xlu1 %106  ;;  %v59_v2 = vpop.permute.xlu0 %58 }
  0xb2   :  { %vm115_vm8 = vcmp.eq.s32.totalorder %v107_v15, %v1696_v62  ;;  %vm116_vm9 = vcmp.eq.s32.totalorder %v107_v15, %v1701_v13  ;;  %vm117_vm10 = vcmp.eq.s32.totalorder %v107_v15, %v1704_v63  ;;  %vm118_vm11 = vcmp.eq.s32.totalorder %v107_v15, %v1707_v14 }
  0xb3   :  { %v127_v16 = vsel %vm115_vm8, 1.0, %v1545_v54  ;;  %v128_v17 = vsel %vm116_vm9, 1.0, %v1545_v54  ;;  %v129_v18 = vsel %vm117_vm10, 1.0, %v1545_v54  ;;  %v130_v19 = vsel %vm118_vm11, 1.0, %v1545_v54  ;;  %1449 = vset.pattern.permute.xlu1 %v1542_v28 }
  0xb4   :  { %v139_v20 = vadd.f32 %v127_v16, %v82_v4  ;;  %v140_v21 = vadd.f32 %v128_v17, %v83_v5  ;;  %v141_v22 = vadd.f32 %v129_v18, %v84_v7  ;;  %v142_v23 = vadd.f32 %v130_v19, %v85_v8  ;;  %691 = vperm.xlu1 %1449, %v1619_v3  }
  0xb5   :  { %v1743_v24 = vpop.permute.xlu0 %64  ;;  %vm66_vm0 = vcmp.eq.s32.totalorder %v59_v2, %v1696_v62  ;;  %vm67_vm1 = vcmp.eq.s32.totalorder %v59_v2, %v1701_v13  ;;  %vm68_vm2 = vcmp.eq.s32.totalorder %v59_v2, %v1704_v63  ;;  %vm69_vm3 = vcmp.eq.s32.totalorder %v59_v2, %v1707_v14 }
  0xb6   :  { %v152_v25 = vpop.permute.xlu1 %151  ;;  %v78_v9 = vsel %vm66_vm0, 1.0, %v1545_v54  ;;  %v79_v31 = vsel %vm67_vm1, 1.0, %v1545_v54  ;;  %v80_v32 = vsel %vm68_vm2, 1.0, %v1545_v54  ;;  %v81_v33 = vsel %vm69_vm3, 1.0, %v1545_v54 }
  0xb7   :  { %vm160_vm8 = vcmp.eq.s32.totalorder %v152_v25, %v1696_v62  ;;  %vm161_vm9 = vcmp.eq.s32.totalorder %v152_v25, %v1701_v13  ;;  %vm162_vm10 = vcmp.eq.s32.totalorder %v152_v25, %v1704_v63  ;;  %vm163_vm4 = vcmp.eq.s32.totalorder %v152_v25, %v1707_v14 }
  0xb8   :  { %1450 = vset.pattern.permute.xlu1 %v1543_v41  ;;  %v172_v34 = vsel %vm160_vm8, 1.0, %v1545_v54  ;;  %v173_v35 = vsel %vm161_vm9, 1.0, %v1545_v54  ;;  %v174_v36 = vsel %vm162_vm10, 1.0, %v1545_v54  ;;  %v175_v37 = vsel %vm163_vm4, 1.0, %v1545_v54 }
  0xb9   :  { %736 = vperm.xlu1 %1450, %v1619_v3   ;;  %v1777_v41 = vadd.f32 %v172_v34, %v139_v20  ;;  %v1779_v39 = vadd.f32 %v173_v35, %v140_v21  ;;  %v1781_v40 = vadd.f32 %v174_v36, %v141_v22  ;;  %v1783_v42 = vadd.f32 %v175_v37, %v142_v23 }
  0xba   :  { %v1775_v38 = vpop.permute.xlu0 %283  ;;  %v135_v3 = vadd.f32 %v123_v26, %v78_v9  ;;  %v136_v44 = vadd.f32 %v124_v27, %v79_v31  ;;  %v137_v45 = vadd.f32 %v125_v29, %v80_v32  ;;  %v138_v46 = vadd.f32 %v126_v30, %v81_v33 }
  0xbb   :  { %v239_v43 = vpop.permute.xlu1 %238  ;;  %vm204_vm11 = vcmp.eq.s32.totalorder %v1709_v1, %v1707_v14  ;;  %vm74_vm12 = vcmp.eq.s32.totalorder %v1743_v24, %v1696_v62  ;;  %vm75_vm13 = vcmp.eq.s32.totalorder %v1743_v24, %v1701_v13  ;;  %vm76_vm14 = vcmp.eq.s32.totalorder %v1743_v24, %v1704_v63 }
  0xbc   :  { %v180_v51 = vadd.f32 %v168_v47, %v135_v3  ;;  %v181_v52 = vadd.f32 %v169_v48, %v136_v44  ;;  %v182_v53 = vadd.f32 %v170_v49, %v137_v45  ;;  %v216_v59 = vsel %vm204_vm11, 1.0, %v1545_v54 }
  0xbd   :  { %1451 = vset.pattern.permute.xlu1 %v1542_v28  ;;  %v171_v28 = vsel %vm159_vm15, 1.0, %v1545_v54  ;;  %vm77_vm15 = vcmp.eq.s32.totalorder %v1743_v24, %v1707_v14  ;;  %vm246_vm0 = vcmp.eq.s32.totalorder %v239_v43, %v1696_v62  ;;  %vm247_vm1 = vcmp.eq.s32.totalorder %v239_v43, %v1701_v13 }
  0xbe   :  { %694 = vperm.xlu1 %1451, %v1628_v6   ;;  %v183_v55 = vadd.f32 %v171_v28, %v138_v46  ;;  %v213_v6 = vsel %vm201_vm5, 1.0, %v1545_v54  ;;  %vm248_vm2 = vcmp.eq.s32.totalorder %v239_v43, %v1704_v63  ;;  %vm249_vm3 = vcmp.eq.s32.totalorder %v239_v43, %v1707_v14 }
  0xbf   :  { %v1811_v50 = vpop.permute.xlu0 %328  ;;  %v86_v60 = vsel %vm74_vm12, 1.0, %v1545_v54  ;;  %v87_v61 = vsel %vm75_vm13, 1.0, %v1545_v54  ;;  %v88_v10 = vsel %vm76_vm14, 1.0, %v1545_v54  ;;  %v89_v11 = vsel %vm77_vm15, 1.0, %v1545_v54 }
  0xc0   :  { %v110_v56 = vpop.permute.xlu1 %109  ;;  %v225_v12 = vadd.f32 %v213_v6, %v180_v51  ;;  %v226_v0 = vadd.f32 %v214_v57, %v181_v52  ;;  %v227_v1 = vadd.f32 %v215_v58, %v182_v53  ;;  %v228_v4 = vadd.f32 %v216_v59, %v183_v55 }
  0xc1   :  { %v258_v8 = vsel %vm246_vm0, 1.0, %v1545_v54  ;;  %v259_v15 = vsel %vm247_vm1, 1.0, %v1545_v54  ;;  %v260_v2 = vsel %vm248_vm2, 1.0, %v1545_v54  ;;  %v261_v16 = vsel %vm249_vm3, 1.0, %v1545_v54 }
  0xc2   :  { %vm291_vm8 = vcmp.eq.s32.totalorder %v1775_v38, %v1696_v62  ;;  %vm292_vm9 = vcmp.eq.s32.totalorder %v1775_v38, %v1701_v13  ;;  %vm293_vm10 = vcmp.eq.s32.totalorder %v1775_v38, %v1704_v63  ;;  %vm294_vm4 = vcmp.eq.s32.totalorder %v1775_v38, %v1707_v14 }
  0xc3   :  { %vm119_vm5 = vcmp.eq.s32.totalorder %v110_v56, %v1696_v62  ;;  %vm120_vm6 = vcmp.eq.s32.totalorder %v110_v56, %v1701_v13  ;;  %vm121_vm7 = vcmp.eq.s32.totalorder %v110_v56, %v1704_v63  ;;  %vm122_vm11 = vcmp.eq.s32.totalorder %v110_v56, %v1707_v14 }
  0xc4   :  { %v1833_v5 = vpop.permute.xlu0 %373  ;;  %v131_v17 = vsel %vm119_vm5, 1.0, %v1545_v54  ;;  %v132_v18 = vsel %vm120_vm6, 1.0, %v1545_v54  ;;  %v133_v19 = vsel %vm121_vm7, 1.0, %v1545_v54  ;;  %v134_v20 = vsel %vm122_vm11, 1.0, %v1545_v54 }
  0xc5   :  { %v197_v7 = vpop.permute.xlu1 %196  ;;  %v143_v21 = vadd.f32 %v131_v17, %v86_v60  ;;  %v144_v22 = vadd.f32 %v132_v18, %v87_v61  ;;  %v145_v23 = vadd.f32 %v133_v19, %v88_v10  ;;  %v146_v24 = vadd.f32 %v134_v20, %v89_v11 }
  0xc6   :  { %v270_v26 = vadd.f32 %v258_v8, %v225_v12  ;;  %v271_v27 = vadd.f32 %v259_v15, %v226_v0  ;;  %v272_v30 = vadd.f32 %v260_v2, %v227_v1  ;;  %v273_v9 = vadd.f32 %v261_v16, %v228_v4 }
  0xc7   :  { %v303_v31 = vsel %vm291_vm8, 1.0, %v1545_v54  ;;  %v304_v32 = vsel %vm292_vm9, 1.0, %v1545_v54  ;;  %v305_v33 = vsel %vm293_vm10, 1.0, %v1545_v54  ;;  %v306_v34 = vsel %vm294_vm4, 1.0, %v1545_v54 }
  0xc8   :  { %vm336_vm12 = vcmp.eq.s32.totalorder %v1811_v50, %v1696_v62  ;;  %vm337_vm13 = vcmp.eq.s32.totalorder %v1811_v50, %v1701_v13  ;;  %vm205_vm14 = vcmp.eq.s32.totalorder %v197_v7, %v1696_v62  ;;  %vm206_vm15 = vcmp.eq.s32.totalorder %v197_v7, %v1701_v13 }
  0xc9   :  { %v1855_v29 = vpop.permute.xlu0 %418  ;;  %vm207_vm0 = vcmp.eq.s32.totalorder %v197_v7, %v1704_v63  ;;  %vm208_vm1 = vcmp.eq.s32.totalorder %v197_v7, %v1707_v14  ;;  %v217_v35 = vsel %vm205_vm14, 1.0, %v1545_v54  ;;  %v218_v36 = vsel %vm206_vm15, 1.0, %v1545_v54 }
  0xca   :  { %v155_v25 = vpop.permute.xlu1 %154  ;;  %v219_v37 = vsel %vm207_vm0, 1.0, %v1545_v54  ;;  %v220_v38 = vsel %vm208_vm1, 1.0, %v1545_v54  ;;  %v1888_v3 = vadd.f32 %v217_v35, %v1777_v41  ;;  %v1891_v44 = vadd.f32 %v218_v36, %v1779_v39 }
  0xcb   :  { %v231_v45 = vadd.f32 %v219_v37, %v1781_v40  ;;  %v1895_v46 = vadd.f32 %v220_v38, %v1783_v42  ;;  %v315_v48 = vadd.f32 %v303_v31, %v270_v26  ;;  %v316_v49 = vadd.f32 %v304_v32, %v271_v27 }
  0xcc   :  { %v317_v28 = vadd.f32 %v305_v33, %v272_v30  ;;  %v318_v51 = vadd.f32 %v306_v34, %v273_v9  ;;  %vm338_vm2 = vcmp.eq.s32.totalorder %v1811_v50, %v1704_v63  ;;  %vm339_vm3 = vcmp.eq.s32.totalorder %v1811_v50, %v1707_v14 }
  0xcd   :  { %v348_v41 = vsel %vm336_vm12, 1.0, %v1545_v54  ;;  %v349_v39 = vsel %vm337_vm13, 1.0, %v1545_v54  ;;  %vm164_vm8 = vcmp.eq.s32.totalorder %v155_v25, %v1696_v62  ;;  %vm165_vm9 = vcmp.eq.s32.totalorder %v155_v25, %v1701_v13 }
  0xce   :  { %v1897_v47 = vpop.permute.xlu0 %463  ;;  %vm166_vm10 = vcmp.eq.s32.totalorder %v155_v25, %v1704_v63  ;;  %vm167_vm4 = vcmp.eq.s32.totalorder %v155_v25, %v1707_v14  ;;  %v176_v42 = vsel %vm164_vm8, 1.0, %v1545_v54  ;;  %v177_v52 = vsel %vm165_vm9, 1.0, %v1545_v54 }
  0xcf   :  { %v1885_v43 = vpop.permute.xlu1 %241  ;;  %v178_v53 = vsel %vm166_vm10, 1.0, %v1545_v54  ;;  %v179_v55 = vsel %vm167_vm4, 1.0, %v1545_v54  ;;  %v188_v56 = vadd.f32 %v176_v42, %v143_v21  ;;  %v1921_v6 = vadd.f32 %v177_v52, %v144_v22 }
  0xd0   :  { %v190_v57 = vadd.f32 %v178_v53, %v145_v23  ;;  %v1923_v58 = vadd.f32 %v179_v55, %v146_v24  ;;  %v350_v59 = vsel %vm338_vm2, 1.0, %v1545_v54  ;;  %v351_v60 = vsel %vm339_vm3, 1.0, %v1545_v54 }
  0xd1   :  { %vm381_vm5 = vcmp.eq.s32.totalorder %v1833_v5, %v1696_v62  ;;  %vm382_vm6 = vcmp.eq.s32.totalorder %v1833_v5, %v1701_v13  ;;  %vm383_vm7 = vcmp.eq.s32.totalorder %v1833_v5, %v1704_v63  ;;  %vm384_vm11 = vcmp.eq.s32.totalorder %v1833_v5, %v1707_v14 }
  0xd2   :  { %v360_v10 = vadd.f32 %v348_v41, %v315_v48  ;;  %v361_v11 = vadd.f32 %v349_v39, %v316_v49  ;;  %v362_v50 = vadd.f32 %v350_v59, %v317_v28  ;;  %v363_v0 = vadd.f32 %v351_v60, %v318_v51 }
  0xd3   :  { %v1935_v61 = vpop.permute.xlu0 %508  ;;  %v393_v1 = vsel %vm381_vm5, 1.0, %v1545_v54  ;;  %vm252_vm12 = vcmp.eq.s32.totalorder %v1885_v43, %v1704_v63  ;;  %v394_v4 = vsel %vm382_vm6, 1.0, %v1545_v54  ;;  %v395_v7 = vsel %vm383_vm7, 1.0, %v1545_v54 }
  0xd4   :  { %v1915_v40 = vpop.permute.xlu1 %199  ;;  %v396_v8 = vsel %vm384_vm11, 1.0, %v1545_v54  ;;  %v264_v15 = vsel %vm252_vm12, 1.0, %v1545_v54  ;;  %vm426_vm13 = vcmp.eq.s32.totalorder %v1855_v29, %v1696_v62  ;;  %vm427_vm14 = vcmp.eq.s32.totalorder %v1855_v29, %v1701_v13 }
  0xd5   :  { %vm428_vm15 = vcmp.eq.s32.totalorder %v1855_v29, %v1704_v63  ;;  %v1958_v5 = vadd.f32 %v264_v15, %v231_v45  ;;  %v405_v16 = vadd.f32 %v393_v1, %v360_v10  ;;  %v406_v17 = vadd.f32 %v394_v4, %v361_v11 }
  0xd6   :  { %v407_v18 = vadd.f32 %v395_v7, %v362_v50  ;;  %v408_v19 = vadd.f32 %v396_v8, %v363_v0  ;;  %vm429_vm0 = vcmp.eq.s32.totalorder %v1855_v29, %v1707_v14  ;;  %v438_v21 = vsel %vm426_vm13, 1.0, %v1545_v54 }
  0xd7   :  { %v439_v22 = vsel %vm427_vm14, 1.0, %v1545_v54  ;;  %v440_v23 = vsel %vm428_vm15, 1.0, %v1545_v54  ;;  %vm471_vm1 = vcmp.eq.s32.totalorder %v1897_v47, %v1696_v62  ;;  %vm472_vm2 = vcmp.eq.s32.totalorder %v1897_v47, %v1701_v13 }
  0xd8   :  { %v1960_v2 = vpop.permute.xlu0 %553  ;;  %vm209_vm3 = vcmp.eq.s32.totalorder %v1915_v40, %v1696_v62  ;;  %vm211_vm8 = vcmp.eq.s32.totalorder %v1915_v40, %v1704_v63  ;;  %vm473_vm9 = vcmp.eq.s32.totalorder %v1897_v47, %v1704_v63  ;;  %vm474_vm10 = vcmp.eq.s32.totalorder %v1897_v47, %v1707_v14 }
  0xd9   :  { %v1943_v12 = vpop.permute.xlu1 %286  ;;  %v221_v24 = vsel %vm209_vm3, 1.0, %v1545_v54  ;;  %v223_v25 = vsel %vm211_vm8, 1.0, %v1545_v54  ;;  %v441_v26 = vsel %vm429_vm0, 1.0, %v1545_v54  ;;  %v450_v27 = vadd.f32 %v438_v21, %v405_v16 }
  0xda   :  { %v1984_v29 = vadd.f32 %v221_v24, %v188_v56  ;;  %v1986_v30 = vadd.f32 %v223_v25, %v190_v57  ;;  %v451_v9 = vadd.f32 %v439_v22, %v406_v17  ;;  %v452_v31 = vadd.f32 %v440_v23, %v407_v18 }
  0xdb   :  { %v483_v32 = vsel %vm471_vm1, 1.0, %v1545_v54  ;;  %vm250_vm4 = vcmp.eq.s32.totalorder %v1885_v43, %v1696_v62  ;;  %v484_v35 = vsel %vm472_vm2, 1.0, %v1545_v54  ;;  %v485_v36 = vsel %vm473_vm9, 1.0, %v1545_v54 }
  0xdc   :  { %v486_v37 = vsel %vm474_vm10, 1.0, %v1545_v54  ;;  %vm251_vm5 = vcmp.eq.s32.totalorder %v1885_v43, %v1701_v13  ;;  %v453_v38 = vadd.f32 %v441_v26, %v408_v19  ;;  %vm253_vm6 = vcmp.eq.s32.totalorder %v1885_v43, %v1707_v14 }
  0xdd   :  { %v1991_v33 = vpop.permute.xlu0 %598  ;;  %vm516_vm7 = vcmp.eq.s32.totalorder %v1935_v61, %v1696_v62  ;;  %vm517_vm11 = vcmp.eq.s32.totalorder %v1935_v61, %v1701_v13  ;;  %v495_v45 = vadd.f32 %v483_v32, %v450_v27  ;;  %v262_v47 = vsel %vm250_vm4, 1.0, %v1545_v54 }
  0xde   :  { %v1962_v20 = vpop.permute.xlu1 %244  ;;  %vm518_vm12 = vcmp.eq.s32.totalorder %v1935_v61, %v1704_v63  ;;  %v496_v48 = vadd.f32 %v484_v35, %v451_v9  ;;  %v497_v49 = vadd.f32 %v485_v36, %v452_v31  ;;  %v498_v28 = vadd.f32 %v486_v37, %v453_v38 }
  0xdf   :  { %v263_v51 = vsel %vm251_vm5, 1.0, %v1545_v54  ;;  %v265_v43 = vsel %vm253_vm6, 1.0, %v1545_v54  ;;  %vm519_vm13 = vcmp.eq.s32.totalorder %v1935_v61, %v1707_v14  ;;  %v528_v39 = vsel %vm516_vm7, 1.0, %v1545_v54 }
  0xe0   :  { %v529_v42 = vsel %vm517_vm11, 1.0, %v1545_v54  ;;  %v274_v53 = vadd.f32 %v262_v47, %v1888_v3  ;;  %v530_v55 = vsel %vm518_vm12, 1.0, %v1545_v54  ;;  %vm210_vm14 = vcmp.eq.s32.totalorder %v1915_v40, %v1701_v13 }
  0xe1   :  { %vm212_vm15 = vcmp.eq.s32.totalorder %v1915_v40, %v1707_v14  ;;  %v275_v56 = vadd.f32 %v263_v51, %v1891_v44  ;;  %vm561_vm0 = vcmp.eq.s32.totalorder %v1960_v2, %v1696_v62  ;;  %vm562_vm1 = vcmp.eq.s32.totalorder %v1960_v2, %v1701_v13 }
  0xe2   :  { %v2013_v41 = vpop.permute.xlu0 %688  ;;  %vm563_vm2 = vcmp.eq.s32.totalorder %v1960_v2, %v1704_v63  ;;  %v277_v3 = vadd.f32 %v265_v43, %v1895_v46  ;;  %v531_v57 = vsel %vm519_vm13, 1.0, %v1545_v54  ;;  %v540_v59 = vadd.f32 %v528_v39, %v495_v45 }
  0xe3   :  { %v1993_v34 = vpop.permute.xlu1 %331  ;;  %v541_v60 = vadd.f32 %v529_v42, %v496_v48  ;;  %v542_v61 = vadd.f32 %v530_v55, %v497_v49  ;;  %v222_v40 = vsel %vm210_vm14, 1.0, %v1545_v54  ;;  %v224_v44 = vsel %vm212_vm15, 1.0, %v1545_v54 }
  0xe4   :  { %vm564_vm3 = vcmp.eq.s32.totalorder %v1960_v2, %v1707_v14  ;;  %v573_v10 = vsel %vm561_vm0, 1.0, %v1545_v54  ;;  %v574_v11 = vsel %vm562_vm1, 1.0, %v1545_v54  ;;  %v575_v50 = vsel %vm563_vm2, 1.0, %v1545_v54 }
  0xe5   :  { %vm295_vm8 = vcmp.eq.s32.totalorder %v1943_v12, %v1696_v62  ;;  %v543_v1 = vadd.f32 %v531_v57, %v498_v28  ;;  %vm296_vm9 = vcmp.eq.s32.totalorder %v1943_v12, %v1701_v13  ;;  %vm297_vm10 = vcmp.eq.s32.totalorder %v1943_v12, %v1704_v63 }
  0xe6   :  { %vm298_vm4 = vcmp.eq.s32.totalorder %v1943_v12, %v1707_v14  ;;  %v234_v4 = vadd.f32 %v222_v40, %v1921_v6  ;;  %v2058_v7 = vadd.f32 %v224_v44, %v1923_v58  ;;  %v576_v8 = vsel %vm564_vm3, 1.0, %v1545_v54 }
  0xe7   :  { %v2046_v46 = vpop.permute.xlu0 %733  ;;  %vm606_vm5 = vcmp.eq.s32.totalorder %v1991_v33, %v1696_v62  ;;  %v585_v15 = vadd.f32 %v573_v10, %v540_v59  ;;  %v586_v2 = vadd.f32 %v574_v11, %v541_v60  ;;  %v587_v16 = vadd.f32 %v575_v50, %v542_v61 }
  0xe8   :  { %v2020_v52 = vpop.permute.xlu1 %289  ;;  %v307_v17 = vsel %vm295_vm8, 1.0, %v1545_v54  ;;  %v308_v18 = vsel %vm296_vm9, 1.0, %v1545_v54  ;;  %v309_v19 = vsel %vm297_vm10, 1.0, %v1545_v54  ;;  %v310_v12 = vsel %vm298_vm4, 1.0, %v1545_v54 }
  0xe9   :  { %vm608_vm6 = vcmp.eq.s32.totalorder %v1991_v33, %v1704_v63  ;;  %v588_v6 = vadd.f32 %v576_v8, %v543_v1  ;;  %vm607_vm7 = vcmp.eq.s32.totalorder %v1991_v33, %v1701_v13  ;;  %vm609_vm11 = vcmp.eq.s32.totalorder %v1991_v33, %v1707_v14 }
  0xea   :  { %v618_v58 = vsel %vm606_vm5, 1.0, %v1545_v54  ;;  %v2076_v22 = vadd.f32 %v307_v17, %v274_v53  ;;  %vm254_vm12 = vcmp.eq.s32.totalorder %v1962_v20, %v1696_v62  ;;  %vm255_vm13 = vcmp.eq.s32.totalorder %v1962_v20, %v1701_v13 }
  0xeb   :  { %vm256_vm14 = vcmp.eq.s32.totalorder %v1962_v20, %v1704_v63  ;;  %v2084_v24 = vadd.f32 %v308_v18, %v275_v56  ;;  %v2087_v25 = vadd.f32 %v309_v19, %v1958_v5  ;;  %v2089_v26 = vadd.f32 %v310_v12, %v277_v3 }
  0xec   :  { %v644_v23 = vpop.permute.xlu0 %643  ;;  %v620_v27 = vsel %vm608_vm6, 1.0, %v1545_v54  ;;  %v619_v9 = vsel %vm607_vm7, 1.0, %v1545_v54  ;;  %v621_v31 = vsel %vm609_vm11, 1.0, %v1545_v54  ;;  %v630_v32 = vadd.f32 %v618_v58, %v585_v15 }
  0xed   :  { %v2048_v0 = vpop.permute.xlu1 %376  ;;  %vm257_vm15 = vcmp.eq.s32.totalorder %v1962_v20, %v1707_v14  ;;  %v266_v33 = vsel %vm254_vm12, 1.0, %v1545_v54  ;;  %v267_v35 = vsel %vm255_vm13, 1.0, %v1545_v54  ;;  %v268_v36 = vsel %vm256_vm14, 1.0, %v1545_v54 }
  0xee   :  { %vm651_vm0 = vcmp.eq.s32.totalorder %v644_v23, %v1696_v62  ;;  %v632_v5 = vadd.f32 %v620_v27, %v587_v16  ;;  %vm340_vm1 = vcmp.eq.s32.totalorder %v1993_v34, %v1696_v62  ;;  %vm341_vm2 = vcmp.eq.s32.totalorder %v1993_v34, %v1701_v13 }
  0xef   :  { %vm653_vm3 = vcmp.eq.s32.totalorder %v644_v23, %v1704_v63  ;;  %v269_v20 = vsel %vm257_vm15, 1.0, %v1545_v54  ;;  %vm342_vm8 = vcmp.eq.s32.totalorder %v1993_v34, %v1704_v63  ;;  %vm696_vm9 = vcmp.eq.s32.totalorder %v2013_v41, %v1696_v62 }
  0xf0   :  { %vm698_vm10 = vcmp.eq.s32.totalorder %v2013_v41, %v1704_v63  ;;  %v278_v38 = vadd.f32 %v266_v33, %v1984_v29  ;;  %v279_v45 = vadd.f32 %v267_v35, %v234_v4  ;;  %v280_v47 = vadd.f32 %v268_v36, %v1986_v30 }
  0xf1   :  { %v663_v48 = vsel %vm651_vm0, 1.0, %v1545_v54  ;;  %vm343_vm4 = vcmp.eq.s32.totalorder %v1993_v34, %v1707_v14  ;;  %v352_v49 = vsel %vm340_vm1, 1.0, %v1545_v54  ;;  %v353_v28 = vsel %vm341_vm2, 1.0, %v1545_v54 }
  0xf2   :  { %v2074_v21 = vpop.permute.xlu1 %334  ;;  %v665_v51 = vsel %vm653_vm3, 1.0, %v1545_v54  ;;  %v354_v43 = vsel %vm342_vm8, 1.0, %v1545_v54  ;;  %v708_v39 = vsel %vm696_vm9, 1.0, %v1545_v54  ;;  %v710_v29 = vsel %vm698_vm10, 1.0, %v1545_v54 }
  0xf3   :  { %vm652_vm5 = vcmp.eq.s32.totalorder %v644_v23, %v1701_v13  ;;  %vm299_vm6 = vcmp.eq.s32.totalorder %v2020_v52, %v1696_v62  ;;  %vm300_vm7 = vcmp.eq.s32.totalorder %v2020_v52, %v1701_v13  ;;  %vm654_vm11 = vcmp.eq.s32.totalorder %v644_v23, %v1707_v14 }
  0xf4   :  { %v675_v30 = vadd.f32 %v663_v48, %v630_v32  ;;  %vm301_vm12 = vcmp.eq.s32.totalorder %v2020_v52, %v1704_v63  ;;  %vm302_vm13 = vcmp.eq.s32.totalorder %v2020_v52, %v1707_v14  ;;  %vm741_vm14 = vcmp.eq.s32.totalorder %v2046_v46, %v1696_v62 }
  0xf5   :  { %v677_v53 = vadd.f32 %v665_v51, %v632_v5  ;;  %v631_v55 = vadd.f32 %v619_v9, %v586_v2  ;;  %v664_v56 = vsel %vm652_vm5, 1.0, %v1545_v54  ;;  %vm697_vm15 = vcmp.eq.s32.totalorder %v2013_v41, %v1701_v13 }
  0xf6   :  { %vm742_vm0 = vcmp.eq.s32.totalorder %v2046_v46, %v1701_v13  ;;  %vm743_vm1 = vcmp.eq.s32.totalorder %v2046_v46, %v1704_v63  ;;  %v709_v3 = vsel %vm697_vm15, 1.0, %v1545_v54  ;;  %v633_v57 = vadd.f32 %v621_v31, %v588_v6 }
  0xf7   :  { %v2105_v37 = vpop.permute.xlu1 %421  ;;  %v666_v59 = vsel %vm654_vm11, 1.0, %v1545_v54  ;;  %v676_v60 = vadd.f32 %v664_v56, %v631_v55  ;;  %vm699_vm2 = vcmp.eq.s32.totalorder %v2013_v41, %v1707_v14  ;;  %vm744_vm3 = vcmp.eq.s32.totalorder %v2046_v46, %v1707_v14 }
  0xf8   :  { %v720_v61 = vadd.f32 %v708_v39, %v675_v30  ;;  %v754_v40 = vsel %vm742_vm0, 1.0, %v1545_v54  ;;  %v678_v44 = vadd.f32 %v666_v59, %v633_v57  ;;  %v711_v10 = vsel %vm699_vm2, 1.0, %v1545_v54 }
  0xf9   :  { %v753_v11 = vsel %vm741_vm14, 1.0, %v1545_v54  ;;  %v721_v1 = vadd.f32 %v709_v3, %v676_v60  ;;  %v756_v4 = vsel %vm744_vm3, 1.0, %v1545_v54  ;;  %v722_v41 = vadd.f32 %v710_v29, %v677_v53 }
  0xfa   :  { %v755_v8 = vsel %vm743_vm1, 1.0, %v1545_v54  ;;  %v355_v15 = vsel %vm343_vm4, 1.0, %v1545_v54  ;;  %v311_v2 = vsel %vm299_vm6, 1.0, %v1545_v54  ;;  %v723_v16 = vadd.f32 %v711_v10, %v678_v44 }
  0xfb   :  { %v765_v17 = vadd.f32 %v753_v11, %v720_v61  ;;  %v312_v18 = vsel %vm300_vm7, 1.0, %v1545_v54  ;;  %v313_v46 = vsel %vm301_vm12, 1.0, %v1545_v54  ;;  %v766_v19 = vadd.f32 %v754_v40, %v721_v1 }
  0xfc   :  { %v2131_v42 = vpop.permute.xlu1 %379  ;;  %v767_v34 = vadd.f32 %v755_v8, %v722_v41  ;;  %v281_v12 = vadd.f32 %v269_v20, %v2058_v7  ;;  %v364_v6 = vadd.f32 %v352_v49, %v2076_v22  ;;  %v314_v58 = vsel %vm302_vm13, 1.0, %v1545_v54 }
  0xfd   :  { %v768_v23 = vadd.f32 %v756_v4, %v723_v16  ;;  %v365_v27 = vadd.f32 %v353_v28, %v2084_v24  ;;  %v366_v9 = vadd.f32 %v354_v43, %v2087_v25  ;;  %v367_v31 = vadd.f32 %v355_v15, %v2089_v26  ;;  %912 = vmatprep.mubr.f32.mxu0 %v766_v19 }
  0xfe   :  { %v323_v32 = vadd.f32 %v311_v2, %v278_v38  ;;  %v324_v35 = vadd.f32 %v312_v18, %v279_v45  ;;  %v325_v7 = vadd.f32 %v313_v46, %v280_v47  ;;  %vm385_vm8 = vcmp.eq.s32.totalorder %v2048_v0, %v1696_v62  ;;  %913 = vmatmul.mubr.f32.vlgmr.msra.gmra.mrb[0].mxu0 %v765_v17 }
  0xff   :  { %992 = vmatprep.mubr.f32.mxu1 %v768_v23  ;;  %v326_v52 = vadd.f32 %v314_v58, %v281_v12  ;;  %vm386_vm9 = vcmp.eq.s32.totalorder %v2048_v0, %v1701_v13  ;;  %vm387_vm10 = vcmp.eq.s32.totalorder %v2048_v0, %v1704_v63  ;;  %v1546_v22 = vmov 0.0|0.0  }
 0x100   :  { %993 = vmatmul.mubr.f32.vlgmr.msra.gmra.mrb[0].mxu1 %v767_v34  ;;  %1343 = vmatprep.subr.bf16.mxu0 %v1546_v22  ;;  %vm388_vm4 = vcmp.eq.s32.totalorder %v2048_v0, %v1707_v14  ;;  %vm344_vm5 = vcmp.eq.s32.totalorder %v2074_v21, %v1696_v62  ;;  %vm345_vm6 = vcmp.eq.s32.totalorder %v2074_v21, %v1701_v13  ;;  %v397_v24 = vsel %vm385_vm8, 1.0, %v1545_v54 }
 0x101   :  { %v2158_v50 = vpop.permute.xlu1 %466  ;;  %vm346_vm7 = vcmp.eq.s32.totalorder %v2074_v21, %v1704_v63  ;;  %1367 = vmatprep.subr.bf16.mxu1 %v1546_v22  ;;  %vm347_vm11 = vcmp.eq.s32.totalorder %v2074_v21, %v1707_v14  ;;  %vm430_vm12 = vcmp.eq.s32.totalorder %v2105_v37, %v1696_v62  ;;  %vm431_vm13 = vcmp.eq.s32.totalorder %v2105_v37, %v1701_v13 }
 0x102   :  { %v398_v0 = vsel %vm386_vm9, 1.0, %v1545_v54  ;;  %v399_v25 = vsel %vm387_vm10, 1.0, %v1545_v54  ;;  %vm432_vm14 = vcmp.eq.s32.totalorder %v2105_v37, %v1704_v63  ;;  %vm433_vm15 = vcmp.eq.s32.totalorder %v2105_v37, %v1707_v14 }
 0x103   :  { %v400_v21 = vsel %vm388_vm4, 1.0, %v1545_v54  ;;  %v356_v36 = vsel %vm344_vm5, 1.0, %v1545_v54  ;;  %v357_v5 = vsel %vm345_vm6, 1.0, %v1545_v54  ;;  %v358_v20 = vsel %vm346_vm7, 1.0, %v1545_v54 }
 0x104   :  { %v409_v38 = vadd.f32 %v397_v24, %v364_v6  ;;  %v359_v45 = vsel %vm347_vm11, 1.0, %v1545_v54  ;;  %v442_v47 = vsel %vm430_vm12, 1.0, %v1545_v54  ;;  %v443_v48 = vsel %vm431_vm13, 1.0, %v1545_v54 }
 0x105   :  { %v410_v49 = vadd.f32 %v398_v0, %v365_v27  ;;  %v411_v28 = vadd.f32 %v399_v25, %v366_v9  ;;  %v444_v37 = vsel %vm432_vm14, 1.0, %v1545_v54  ;;  %v445_v51 = vsel %vm433_vm15, 1.0, %v1545_v54 }
 0x106   :  { %v2190_v33 = vpop.permute.xlu1 %424  ;;  %v412_v43 = vadd.f32 %v400_v21, %v367_v31  ;;  %v368_v39 = vadd.f32 %v356_v36, %v323_v32  ;;  %v369_v29 = vadd.f32 %v357_v5, %v324_v35  ;;  %v370_v30 = vadd.f32 %v358_v20, %v325_v7 }
 0x107   :  { %v371_v53 = vadd.f32 %v359_v45, %v326_v52  ;;  %v454_v55 = vadd.f32 %v442_v47, %v409_v38  ;;  %v455_v56 = vadd.f32 %v443_v48, %v410_v49  ;;  %vm389_vm0 = vcmp.eq.s32.totalorder %v2131_v42, %v1696_v62  ;;  %v2298_v47 = vpop.permute.xlu0 %649  ;;  %v1011_v48 = vld [vmem:[#allocation5] sm:$0xff]  ;;  %v1012_v49 = vld [vmem:[#allocation5 + $0x8] sm:$0xff] }
 0x108   :  { %v456_v57 = vadd.f32 %v444_v37, %v411_v28  ;;  %v457_v59 = vadd.f32 %v445_v51, %v412_v43  ;;  %vm390_vm1 = vcmp.eq.s32.totalorder %v2131_v42, %v1701_v13  ;;  %vm391_vm2 = vcmp.eq.s32.totalorder %v2131_v42, %v1704_v63 }
 0x109   :  { %vm392_vm3 = vcmp.eq.s32.totalorder %v2131_v42, %v1707_v14  ;;  %vm475_vm8 = vcmp.eq.s32.totalorder %v2158_v50, %v1696_v62  ;;  %vm476_vm9 = vcmp.eq.s32.totalorder %v2158_v50, %v1701_v13  ;;  %vm477_vm10 = vcmp.eq.s32.totalorder %v2158_v50, %v1704_v63 }
 0x10a   :  { %v401_v60 = vsel %vm389_vm0, 1.0, %v1545_v54  ;;  %vm478_vm4 = vcmp.eq.s32.totalorder %v2158_v50, %v1707_v14  ;;  %vm434_vm5 = vcmp.eq.s32.totalorder %v2190_v33, %v1696_v62  ;;  %vm435_vm6 = vcmp.eq.s32.totalorder %v2190_v33, %v1701_v13 }
 0x10b   :  { %v2221_v26 = vpop.permute.xlu1 %511  ;;  %v402_v42 = vsel %vm390_vm1, 1.0, %v1545_v54  ;;  %v403_v61 = vsel %vm391_vm2, 1.0, %v1545_v54  ;;  %vm436_vm7 = vcmp.eq.s32.totalorder %v2190_v33, %v1704_v63  ;;  %vm437_vm11 = vcmp.eq.s32.totalorder %v2190_v33, %v1707_v14 }
 0x10c   :  { %v404_v40 = vsel %vm392_vm3, 1.0, %v1545_v54  ;;  %v487_v44 = vsel %vm475_vm8, 1.0, %v1545_v54  ;;  %v488_v10 = vsel %vm476_vm9, 1.0, %v1545_v54  ;;  %v489_v11 = vsel %vm477_vm10, 1.0, %v1545_v54 }
 0x10d   :  { %v413_v1 = vadd.f32 %v401_v60, %v368_v39  ;;  %v490_v4 = vsel %vm478_vm4, 1.0, %v1545_v54  ;;  %v446_v41 = vsel %vm434_vm5, 1.0, %v1545_v54  ;;  %v447_v8 = vsel %vm435_vm6, 1.0, %v1545_v54 }
 0x10e   :  { %v414_v15 = vadd.f32 %v402_v42, %v369_v29  ;;  %v415_v2 = vadd.f32 %v403_v61, %v370_v30  ;;  %v448_v16 = vsel %vm436_vm7, 1.0, %v1545_v54  ;;  %v449_v17 = vsel %vm437_vm11, 1.0, %v1545_v54  ;;  %v1015_v61 = vld [vmem:[#allocation5 + $0x20] sm:$0xff] }
 0x10f   :  { %v416_v18 = vadd.f32 %v404_v40, %v371_v53  ;;  %v499_v46 = vadd.f32 %v487_v44, %v454_v55  ;;  %v500_v19 = vadd.f32 %v488_v10, %v455_v56  ;;  %v501_v34 = vadd.f32 %v489_v11, %v456_v57  ;;  %v1013_v53 = vld [vmem:[#allocation5 + $0x10] sm:$0xff]  ;;  %v1014_v55 = vld [vmem:[#allocation5 + $0x18] sm:$0xff]  ;;  %v1016_v40 = vld [vmem:[#allocation5 + $0x28] sm:$0xff] }
 0x110   :  { %v470_v3 = vpop.permute.xlu1 %469  ;;  %v502_v12 = vadd.f32 %v490_v4, %v457_v59  ;;  %v458_v6 = vadd.f32 %v446_v41, %v413_v1  ;;  %v459_v58 = vadd.f32 %v447_v8, %v414_v15  ;;  %vm520_vm12 = vcmp.eq.s32.totalorder %v2221_v26, %v1696_v62 }
 0x111   :  { %v460_v23 = vadd.f32 %v448_v16, %v415_v2  ;;  %v461_v27 = vadd.f32 %v449_v17, %v416_v18  ;;  %vm521_vm13 = vcmp.eq.s32.totalorder %v2221_v26, %v1701_v13  ;;  %vm522_vm14 = vcmp.eq.s32.totalorder %v2221_v26, %v1704_v63  ;;  %v1017_v18 = vld [vmem:[#allocation5 + $0x30] sm:$0xff] }
 0x112   :  { %vm523_vm15 = vcmp.eq.s32.totalorder %v2221_v26, %v1707_v14  ;;  %vm479_vm0 = vcmp.eq.s32.totalorder %v470_v3, %v1696_v62  ;;  %vm480_vm1 = vcmp.eq.s32.totalorder %v470_v3, %v1701_v13  ;;  %vm481_vm2 = vcmp.eq.s32.totalorder %v470_v3, %v1704_v63 }
 0x113   :  { %v532_v31 = vsel %vm520_vm12, 1.0, %v1545_v54  ;;  %vm482_vm3 = vcmp.eq.s32.totalorder %v470_v3, %v1707_v14  ;;  %v533_v32 = vsel %vm521_vm13, 1.0, %v1545_v54  ;;  %v534_v33 = vsel %vm522_vm14, 1.0, %v1545_v54 }
 0x114   :  { %v535_v35 = vsel %vm523_vm15, 1.0, %v1545_v54  ;;  %v491_v7 = vsel %vm479_vm0, 1.0, %v1545_v54  ;;  %v492_v52 = vsel %vm480_vm1, 1.0, %v1545_v54  ;;  %v493_v24 = vsel %vm481_vm2, 1.0, %v1545_v54 }
 0x115   :  { %v557_v50 = vpop.permute.xlu1 %556  ;;  %v544_v0 = vadd.f32 %v532_v31, %v499_v46  ;;  %v494_v25 = vsel %vm482_vm3, 1.0, %v1545_v54  ;;  %v545_v5 = vadd.f32 %v533_v32, %v500_v19  ;;  %v546_v20 = vadd.f32 %v534_v33, %v501_v34  ;;  %v1018_v46 = vld [vmem:[#allocation5 + $0x38] sm:$0xff]  ;;  %v1019_v19 = vld [vmem:[#allocation5 + $0x40] sm:$0xff] }
 0x116   :  { %vm565_vm8 = vcmp.eq.s32.totalorder %v557_v50, %v1696_v62  ;;  %vm566_vm9 = vcmp.eq.s32.totalorder %v557_v50, %v1701_v13  ;;  %vm567_vm10 = vcmp.eq.s32.totalorder %v557_v50, %v1704_v63  ;;  %vm568_vm4 = vcmp.eq.s32.totalorder %v557_v50, %v1707_v14 }
 0x117   :  { %v577_v26 = vsel %vm565_vm8, 1.0, %v1545_v54  ;;  %v578_v21 = vsel %vm566_vm9, 1.0, %v1545_v54  ;;  %v579_v38 = vsel %vm567_vm10, 1.0, %v1545_v54  ;;  %v580_v45 = vsel %vm568_vm4, 1.0, %v1545_v54 }
 0x118   :  { %v547_v28 = vadd.f32 %v535_v35, %v502_v12  ;;  %v503_v37 = vadd.f32 %v491_v7, %v458_v6  ;;  %v504_v51 = vadd.f32 %v492_v52, %v459_v58  ;;  %v505_v43 = vadd.f32 %v493_v24, %v460_v23  ;;  %v1020_v23 = vld [vmem:[#allocation5 + $0x48] sm:$0xff] }
 0x119   :  { %v506_v39 = vadd.f32 %v494_v25, %v461_v27  ;;  %v589_v29 = vadd.f32 %v577_v26, %v544_v0  ;;  %v590_v30 = vadd.f32 %v578_v21, %v545_v5  ;;  %v591_v56 = vadd.f32 %v579_v38, %v546_v20  ;;  %v1021_v27 = vld [vmem:[#allocation5 + $0x50] sm:$0xff]  ;;  %v2383_v20 = vpop.permute.xlu0 %739 }
 0x11a   :  { %v2274_v9 = vpop.permute.xlu1 %514  ;;  %v592_v3 = vadd.f32 %v580_v45, %v547_v28  ;;  %vm659_vm6 = vcmp.eq.s32.totalorder %v2298_v47, %v1696_v62  ;;  %v1344_v57 = vpack.c.bf16 %v1012_v49, %v1011_v48  ;;  %vm660_vm13 = vcmp.eq.s32.totalorder %v2298_v47, %v1701_v13 }
 0x11b   :  { %vm524_vm5 = vcmp.eq.s32.totalorder %v2274_v9, %v1696_v62  ;;  %vm525_vm7 = vcmp.eq.s32.totalorder %v2274_v9, %v1701_v13  ;;  %vm526_vm11 = vcmp.eq.s32.totalorder %v2274_v9, %v1704_v63  ;;  %vm527_vm12 = vcmp.eq.s32.totalorder %v2274_v9, %v1707_v14  ;;  %v1022_v9 = vld [vmem:[#allocation5 + $0x58] sm:$0xff] }
 0x11c   :  { %v536_v60 = vsel %vm524_vm5, 1.0, %v1545_v54  ;;  %vm661_vm14 = vcmp.eq.s32.totalorder %v2298_v47, %v1704_v63  ;;  %vm662_vm15 = vcmp.eq.s32.totalorder %v2298_v47, %v1707_v14  ;;  %1345 = vmatpush3.bf16.msra.mxu0 %v1344_v57  ;;  %v1347_v42 = vpack.c.bf16 %v1014_v55, %v1013_v53  ;;  %1375 = vmatpush3.bf16.msra.mxu1 %v1344_v57 }
 0x11d   :  { %1346 = vmatprep.subr.bf16.mxu0 %v1546_v22  ;;  %v537_v44 = vsel %vm525_vm7, 1.0, %v1545_v54  ;;  %v538_v10 = vsel %vm526_vm11, 1.0, %v1545_v54  ;;  %v539_v11 = vsel %vm527_vm12, 1.0, %v1545_v54  ;;  %1368 = vmatprep.subr.bf16.mxu1 %v1546_v22  ;;  %v548_v50 = vadd.f32 %v536_v60, %v503_v37 }
 0x11e   :  { %v2339_v1 = vsel %vm659_vm6, 1.0, %v1545_v54  ;;  %v2345_v4 = vsel %vm660_vm13, 1.0, %v1545_v54  ;;  %v2351_v41 = vsel %vm661_vm14, 1.0, %v1545_v54  ;;  %v1350_v17 = vpack.c.bf16 %v1016_v40, %v1015_v61 }
 0x11f   :  { %v602_v36 = vpop.permute.xlu1 %601  ;;  %v549_v34 = vadd.f32 %v537_v44, %v504_v51  ;;  %v550_v12 = vadd.f32 %v538_v10, %v505_v43  ;;  %v551_v6 = vadd.f32 %v539_v11, %v506_v39  ;;  %v2374_v35 = vsel %vm662_vm15, 1.0, %v1545_v54 }
 0x120   :  { %vm610_vm0 = vcmp.eq.s32.totalorder %v602_v36, %v1696_v62  ;;  %vm611_vm1 = vcmp.eq.s32.totalorder %v602_v36, %v1701_v13  ;;  %vm612_vm2 = vcmp.eq.s32.totalorder %v602_v36, %v1704_v63  ;;  %vm613_vm3 = vcmp.eq.s32.totalorder %v602_v36, %v1707_v14  ;;  %1348 = vmatpush3.bf16.msra.mxu0 %v1347_v42 }
 0x121   :  { %v622_v8 = vsel %vm610_vm0, 1.0, %v1545_v54  ;;  %v623_v15 = vsel %vm611_vm1, 1.0, %v1545_v54  ;;  %v624_v2 = vsel %vm612_vm2, 1.0, %v1545_v54  ;;  %v625_v58 = vsel %vm613_vm3, 1.0, %v1545_v54  ;;  %1349 = vmatprep.subr.bf16.mxu0 %v1546_v22  ;;  %1376 = vmatpush3.bf16.msra.mxu1 %v1347_v42 }
 0x122   :  { %v634_v31 = vadd.f32 %v622_v8, %v589_v29  ;;  %v635_v32 = vadd.f32 %v623_v15, %v590_v30  ;;  %v636_v33 = vadd.f32 %v624_v2, %v591_v56  ;;  %1369 = vmatprep.subr.bf16.mxu1 %v1546_v22  ;;  %v637_v7 = vadd.f32 %v625_v58, %v592_v3 }
 0x123   :  { %v1353_v52 = vpack.c.bf16 %v1018_v46, %v1017_v18  ;;  %v1356_v24 = vpack.c.bf16 %v1020_v23, %v1019_v19  ;;  %v2377_v0 = vpack.c.bf16 %v1022_v9, %v1021_v27  ;;  %vm749_vm0 = vcmp.eq.s32.totalorder %v2383_v20, %v1696_v62 }
 0x124   :  { %v560_v59 = vpop.permute.xlu1 %559  ;;  %1351 = vmatpush3.bf16.msra.mxu0 %v1350_v17  ;;  %vm750_vm1 = vcmp.eq.s32.totalorder %v2383_v20, %v1701_v13  ;;  %vm751_vm2 = vcmp.eq.s32.totalorder %v2383_v20, %v1704_v63  ;;  %vm752_vm3 = vcmp.eq.s32.totalorder %v2383_v20, %v1707_v14  ;;  %v761_v27 = vsel %vm749_vm0, 1.0, %v1545_v54  ;;  %v1025_v20 = vld [vmem:[#allocation5 + $0x70] sm:$0xff] }
 0x125   :  { %vm569_vm8 = vcmp.eq.s32.totalorder %v560_v59, %v1696_v62  ;;  %vm570_vm9 = vcmp.eq.s32.totalorder %v560_v59, %v1701_v13  ;;  %vm571_vm10 = vcmp.eq.s32.totalorder %v560_v59, %v1704_v63  ;;  %vm572_vm4 = vcmp.eq.s32.totalorder %v560_v59, %v1707_v14  ;;  %1352 = vmatprep.subr.bf16.mxu0 %v1546_v22 }
 0x126   :  { %v581_v25 = vsel %vm569_vm8, 1.0, %v1545_v54  ;;  %v582_v26 = vsel %vm570_vm9, 1.0, %v1545_v54  ;;  %v583_v21 = vsel %vm571_vm10, 1.0, %v1545_v54  ;;  %v584_v36 = vsel %vm572_vm4, 1.0, %v1545_v54  ;;  %1377 = vmatpush3.bf16.msra.mxu1 %v1350_v17 }
 0x127   :  { %1370 = vmatprep.subr.bf16.mxu1 %v1546_v22  ;;  %v593_v38 = vadd.f32 %v581_v25, %v548_v50  ;;  %v594_v45 = vadd.f32 %v582_v26, %v549_v34  ;;  %v595_v47 = vadd.f32 %v583_v21, %v550_v12  ;;  %v596_v48 = vadd.f32 %v584_v36, %v551_v6 }
 0x128   :  { %1354 = vmatpush3.bf16.msra.mxu0 %v1353_v52  ;;  %v762_v9 = vsel %vm750_vm1, 1.0, %v1545_v54  ;;  %vm1547_vm0 = vmmov 0  }
 0x129   :  { %v647_v16 = vpop.permute.xlu1 %646  ;;  %1355 = vmatprep.subr.bf16.mxu0 %v1546_v22 }
 0x12a   :  { %vm655_vm5 = vcmp.eq.s32.totalorder %v647_v16, %v1696_v62  ;;  %vm656_vm6 = vcmp.eq.s32.totalorder %v647_v16, %v1701_v13  ;;  %vm657_vm7 = vcmp.eq.s32.totalorder %v647_v16, %v1704_v63  ;;  %vm658_vm11 = vcmp.eq.s32.totalorder %v647_v16, %v1707_v14  ;;  %1378 = vmatpush3.bf16.msra.mxu1 %v1353_v52 }
 0x12b   :  { %v667_v49 = vsel %vm655_vm5, 1.0, %v1545_v54  ;;  %v668_v28 = vsel %vm656_vm6, 1.0, %v1545_v54  ;;  %v669_v37 = vsel %vm657_vm7, 1.0, %v1545_v54  ;;  %v670_v51 = vsel %vm658_vm11, 1.0, %v1545_v54  ;;  %1371 = vmatprep.subr.bf16.mxu1 %v1546_v22 }
 0x12c   :  { %1357 = vmatpush3.bf16.msra.mxu0 %v1356_v24  ;;  %v679_v59 = vadd.f32 %v667_v49, %v634_v31  ;;  %v680_v60 = vadd.f32 %v668_v28, %v635_v32  ;;  %v681_v42 = vadd.f32 %v669_v37, %v636_v33  ;;  %v682_v61 = vadd.f32 %v670_v51, %v637_v7  ;;  %v1135_v28 = vld [vmem:[%s2510_s2] ss:$0 sm:$0xff] }
 0x12d   :  { %1358 = vmatprep.subr.bf16.mxu0 %v1546_v22  ;;  %v763_v31 = vsel %vm751_vm2, 1.0, %v1545_v54  ;;  %v764_v52 = vsel %vm752_vm3, 1.0, %v1545_v54 }
 0x12e   :  { %v605_v5 = vpop.permute.xlu1 %604  ;;  %1379 = vmatpush3.bf16.msra.mxu1 %v1356_v24 }
 0x12f   :  { %vm614_vm12 = vcmp.eq.s32.totalorder %v605_v5, %v1696_v62  ;;  %vm615_vm13 = vcmp.eq.s32.totalorder %v605_v5, %v1701_v13  ;;  %vm616_vm14 = vcmp.eq.s32.totalorder %v605_v5, %v1704_v63  ;;  %vm617_vm15 = vcmp.eq.s32.totalorder %v605_v5, %v1707_v14  ;;  %1372 = vmatprep.subr.bf16.mxu1 %v1546_v22  ;;  %v1024_v5 = vld [vmem:[#allocation5 + $0x68] sm:$0xff] }
 0x130   :  { %v626_v43 = vsel %vm614_vm12, 1.0, %v1545_v54  ;;  %v627_v39 = vsel %vm615_vm13, 1.0, %v1545_v54  ;;  %v628_v29 = vsel %vm616_vm14, 1.0, %v1545_v54  ;;  %v629_v30 = vsel %vm617_vm15, 1.0, %v1545_v54  ;;  %1360 = vmatpush3.bf16.msra.mxu0 %v2377_v0 }
 0x131   :  { %v638_v40 = vadd.f32 %v626_v43, %v593_v38  ;;  %v639_v44 = vadd.f32 %v627_v39, %v594_v45  ;;  %v640_v10 = vadd.f32 %v628_v29, %v595_v47  ;;  %v641_v11 = vadd.f32 %v629_v30, %v596_v48  ;;  %1361 = vmatprep.subr.bf16.mxu0 %v1546_v22  ;;  %v1026_v45 = vld [vmem:[#allocation5 + $0x78] sm:$0xff] }
 0x132   :  { %1380 = vmatpush3.bf16.msra.mxu1 %v2377_v0  ;;  %v1365_v47 = vpack.c.bf16 %v1026_v45, %v1025_v20 }
 0x133   :  { %v692_v53 = vpop.permute.xlu1 %691  ;;  %v683_v23 = vadd.f32 %v2339_v1, %v638_v40  ;;  %1373 = vmatprep.subr.bf16.mxu1 %v1546_v22  ;;  %v684_v1 = vadd.f32 %v2345_v4, %v639_v44  ;;  %v685_v33 = vadd.f32 %v2351_v41, %v640_v10  ;;  %v686_v7 = vadd.f32 %v2374_v35, %v641_v11 }
 0x134   :  { %vm700_vm8 = vcmp.eq.s32.totalorder %v692_v53, %v1696_v62  ;;  %vm701_vm9 = vcmp.eq.s32.totalorder %v692_v53, %v1701_v13  ;;  %vm702_vm10 = vcmp.eq.s32.totalorder %v692_v53, %v1704_v63  ;;  %vm703_vm4 = vcmp.eq.s32.totalorder %v692_v53, %v1707_v14 }
 0x135   :  { %v712_v55 = vsel %vm700_vm8, 1.0, %v1545_v54  ;;  %v713_v56 = vsel %vm701_vm9, 1.0, %v1545_v54  ;;  %v714_v3 = vsel %vm702_vm10, 1.0, %v1545_v54  ;;  %v715_v57 = vsel %vm703_vm4, 1.0, %v1545_v54 }
 0x136   :  { %v725_v8 = vadd.f32 %v713_v56, %v680_v60  ;;  %v727_v15 = vadd.f32 %v715_v57, %v682_v61  ;;  %v724_v2 = vadd.f32 %v712_v55, %v679_v59  ;;  %v726_v16 = vadd.f32 %v714_v3, %v681_v42 }
 0x138   :  { %v737_v50 = vpop.permute.xlu1 %736 }
 0x139   :  { %vm745_vm5 = vcmp.eq.s32.totalorder %v737_v50, %v1696_v62  ;;  %vm746_vm6 = vcmp.eq.s32.totalorder %v737_v50, %v1701_v13  ;;  %vm747_vm7 = vcmp.eq.s32.totalorder %v737_v50, %v1704_v63  ;;  %vm748_vm11 = vcmp.eq.s32.totalorder %v737_v50, %v1707_v14 }
 0x13a   :  { %v758_v17 = vsel %vm746_vm6, 1.0, %v1545_v54  ;;  %v760_v18 = vsel %vm748_vm11, 1.0, %v1545_v54  ;;  %v757_v46 = vsel %vm745_vm5, 1.0, %v1545_v54  ;;  %v759_v19 = vsel %vm747_vm7, 1.0, %v1545_v54 }
 0x13b   :  { %v770_v34 = vadd.f32 %v758_v17, %v725_v8  ;;  %v772_v12 = vadd.f32 %v760_v18, %v727_v15  ;;  %v769_v6 = vadd.f32 %v757_v46, %v724_v2  ;;  %v771_v58 = vadd.f32 %v759_v19, %v726_v16  ;;  %v1136_v17 = vld [vmem:[%s2512_s4] ss:$0 sm:$0xff] }
 0x13d   :  { %v695_v32 = vpop.permute.xlu1 %694  ;;  %917 = vmatprep.mubr.f32.mxu0 %v770_v34  ;;  %997 = vmatprep.mubr.f32.mxu1 %v772_v12 }
 0x13e   :  { %vm704_vm12 = vcmp.eq.s32.totalorder %v695_v32, %v1696_v62  ;;  %vm705_vm13 = vcmp.eq.s32.totalorder %v695_v32, %v1701_v13  ;;  %vm706_vm14 = vcmp.eq.s32.totalorder %v695_v32, %v1704_v63  ;;  %vm707_vm15 = vcmp.eq.s32.totalorder %v695_v32, %v1707_v14  ;;  %918 = vmatmul.mubr.f32.gmra.mrb[2].mxu0 %v769_v6  ;;  %v1023_v14 = vld [vmem:[#allocation5 + $0x60] sm:$0xff] }
 0x13f   :  { %v716_v4 = vsel %vm704_vm12, 1.0, %v1545_v54  ;;  %v717_v41 = vsel %vm705_vm13, 1.0, %v1545_v54  ;;  %v718_v35 = vsel %vm706_vm14, 1.0, %v1545_v54  ;;  %v719_v24 = vsel %vm707_vm15, 1.0, %v1545_v54  ;;  %998 = vmatmul.mubr.f32.gmra.mrb[2].mxu1 %v771_v58 }
 0x140   :  { %v728_v0 = vadd.f32 %v716_v4, %v683_v23  ;;  %v729_v25 = vadd.f32 %v717_v41, %v684_v1  ;;  %v730_v26 = vadd.f32 %v718_v35, %v685_v33  ;;  %v731_v62 = vadd.f32 %v719_v24, %v686_v7 }
 0x141   :  { %v1362_v38 = vpack.c.bf16 %v1024_v5, %v1023_v14 }
 0x142   :  { %v774_v21 = vadd.f32 %v762_v9, %v729_v25  ;;  %v776_v13 = vadd.f32 %v764_v52, %v731_v62  ;;  %v773_v36 = vadd.f32 %v761_v27, %v728_v0  ;;  %v775_v63 = vadd.f32 %v763_v31, %v730_v26 }
 0x143   :  { %1363 = vmatpush3.bf16.msra.mxu0 %v1362_v38  ;;  %1381 = vmatpush3.bf16.msra.mxu1 %v1362_v38 }
 0x144   :  { %922 = vmatprep.mubr.f32.mxu0 %v774_v21  ;;  %1002 = vmatprep.mubr.f32.mxu1 %v776_v13 }
 0x145   :  { %923 = vmatmul.mubr.f32.gmra.mrb[4].mxu0 %v773_v36  ;;  %1003 = vmatmul.mubr.f32.gmra.mrb[4].mxu1 %v775_v63 }
 0x146   :  { %1270 = vmatprep.mubr.msk.f32.mxu0 %vm1547_vm0, %v1545_v54  ;;  %1273 = vmatprep.mubr.msk.f32.mxu1 %vm1547_vm0, %v1545_v54 }
 0x147   :  { %1364 = vmatprep.subr.bf16.mxu0 %v1546_v22  ;;  %1374 = vmatprep.subr.bf16.mxu1 %v1546_v22 }
 0x148   :  { %1366 = vmatpush3.bf16.msra.mxu0 %v1365_v47  ;;  %1382 = vmatpush3.bf16.msra.mxu1 %v1365_v47 }
 0x1d1   :  { %v1169_v48 = vpop.f32.mrb[0].mxu0 }
 0x1d2   :  { %v1170_v37 = vpop.f32.mrb[1].mxu0 }
 0x1d3   :  { %v1210_v49 = vpop.f32.mrb[0].mxu1  ;;  %v1171_v51 = vadd.f32 %v1170_v37, %v1169_v48 }
 0x1d4   :  { %v1211_v43 = vpop.f32.mrb[1].mxu1 }
 0x1d5   :  { %v1212_v39 = vadd.f32 %v1211_v43, %v1210_v49  ;;  %v915_v29 = vadd.f32 %v1171_v51, %v1135_v28 }
 0x1d7   :  { %v995_v30 = vadd.f32 %v1212_v39, %v915_v29 }
 0x1d9   :  { %v1008_v53 = vmax.f32 %v995_v30, 0.0 }
 0x1db   :  { %1271 = vmatmul.mubr.f32.vlgmr.msra.gmra.mrb[6].mxu0 %v1008_v53 }
 0x211   :  { %v1172_v55 = vpop.f32.mrb[2].mxu0 }
 0x212   :  { %v1213_v56 = vpop.f32.mrb[2].mxu1  ;;  %v1173_v3 = vpop.f32.mrb[3].mxu0 }
 0x213   :  { %v1174_v22 = vadd.f32 %v1173_v3, %v1172_v55  ;;  %v1214_v57 = vpop.f32.mrb[3].mxu1 }
 0x214   :  { %v1215_v59 = vadd.f32 %v1214_v57, %v1213_v56 }
 0x215   :  { %v920_v60 = vadd.f32 %v1174_v22, %v1135_v28 }
 0x217   :  { %v1000_v42 = vadd.f32 %v1215_v59, %v920_v60 }
 0x218   :  { %v1175_v61 = vpop.f32.mrb[4].mxu0  ;;  %v1216_v40 = vpop.f32.mrb[4].mxu1 }
 0x219   :  { %v1009_v44 = vmax.f32 %v1000_v42, 0.0  ;;  %v1176_v10 = vpop.f32.mrb[5].mxu0  ;;  %v1217_v11 = vpop.f32.mrb[5].mxu1 }
 0x21a   :  { %v1177_v50 = vadd.f32 %v1176_v10, %v1175_v61  ;;  %v1218_v8 = vadd.f32 %v1217_v11, %v1216_v40 }
 0x21b   :  { %1274 = vmatmul.mubr.f32.vlgmr.msra.gmra.mrb[6].mxu1 %v1009_v44 }
 0x21c   :  { %v925_v15 = vadd.f32 %v1177_v50, %v1135_v28  ;;  %1276 = vmatprep.mubr.msk.f32.mxu1 %vm1547_vm0, %v1545_v54 }
 0x21e   :  { %v1005_v2 = vadd.f32 %v1218_v8, %v925_v15 }
 0x220   :  { %v1010_v16 = vmax.f32 %v1005_v2, 0.0 }
 0x222   :  { %1277 = vmatmul.mubr.f32.gmra.mrb[8].mxu1 %v1010_v16 }
 0x2ae   :  { %v1100_v18 = vpop.f32.mrb[6].mxu0 }
 0x2af   :  { %v1101_v46 = vadd.f32 %v1136_v17, %v1100_v18  ;;  %v1272_v19 = vpop.f32.mrb[7].mxu0 }
 0x2b1   :  { %1114 = vst [vmem:[#allocation7] sm:$0xff] %v1101_v46 }
 0x2ee   :  { %v1105_v34 = vpop.f32.mrb[6].mxu1 }
 0x2ef   :  { %v1106_v12 = vadd.f32 %v1136_v17, %v1105_v34  ;;  %v1275_v6 = vpop.f32.mrb[7].mxu1 }
 0x2f1   :  { %1115 = vst [vmem:[#allocation7 + $0x8] sm:$0xff] %v1106_v12 }
 0x2f5   :  { %v1110_v58 = vpop.f32.mrb[8].mxu1 }
 0x2f6   :  { %v1111_v23 = vadd.f32 %v1136_v17, %v1110_v58  ;;  %v1278_v54 = vpop.f32.mrb[9].mxu1 }
 0x2f8   :  { %1116 = vst [vmem:[#allocation7 + $0x10] sm:$0xff] %v1111_v23 }
 0x2f9   :  { %1508 = shalt.err (!%p1505_p6)
}
 0x2fa   :  { %s1509_s6 = scalar_lea.hbm %s2513_s5, 384 }
 0x2fb   :  { %p1510_p7 = scmp.ne.s32.totalorder %s2513_s5, %s1509_s6  ;;  %p1513_p8 = scmp.lt.u32.totalorder %s1509_s6, %s2513_s5 }
 0x2fd   :  { %p1515_p9 = pnand %p1513_p8, %p1510_p7 }
 0x2ff   :  { %1518 = shalt.err (!%p1515_p9)
}
 0x300   :  { %1128 = dma.vmem_to_hbm [thread:$0]  %s1123_s26, 384, %s2513_s5, [#allocation4], %s1526_s28, %s1526_s28, %s1527_s29  }
 0x301   :  { %1523 = dma.done.wait [#allocation4], 384  }
 0x302   :  { %1524 = vsyncadd [#allocation4], 4294966912 }
 0x303   :  { %1132 = vsyncpa [#allocation3], 1 }
 0x304   :  { %1133 = vsyncpa [#allocation6], 1 }
 0x305   :  { %1134 = vsyncpa [#allocation4], 1 }

</bundles_post_ra>
